<compile_context>
chip_gen: v5e
topology: v5e:2x2
jax: 0.10.0
libtpu: 0.0.40
codegen_flags: <defaults>
</compile_context>

<pallas_src>
import functools

import jax
import jax.numpy as jnp
from jax import lax
from jax.experimental import pallas as pl
from jax.experimental.pallas import tpu as pltpu

EPS = 1e-5


def _bottleneck_kernel(xt_ref, xm_ref, xb_ref, w1_ref, w2_ref, w3_ref,
                       b1_ref, b2_ref, b3_ref, o_ref, *, W):
    """One (batch, row-tile) grid step.

    xt_ref: (1, W,    Cin) bf16  image row t*TH-1 (clamped) — top conv2 halo
    xm_ref: (1, TH*W, Cin) bf16  image rows [t*TH, (t+1)*TH), flat spatial
    xb_ref: (1, W,    Cin) bf16  image row (t+1)*TH (clamped) — bottom halo
    w1_ref: (Cin, P)       bf16  conv1, bn1 scale folded
    w2_ref: (3, 3P, P)     bf16  conv2 per-kh im2col pack [kw=2|kw=1|kw=0], bn2 folded
    w3_ref: (P, 4P)        bf16  conv3, bn3 scale folded
    b*_ref: (1, C)         f32   folded BatchNorm biases
    o_ref : (1, TH*W, 4P)  bf16
    """
    t = pl.program_id(1)
    last_t = pl.num_programs(1) - 1
    TW = xm_ref.shape[1]
    R = TW + 2 * W                                             # tile rows + halo

    # ---- conv1 (1x1) + bn1(bias) + relu on tile rows plus the row halo ----
    x_all = jnp.concatenate([xt_ref[0], xm_ref[0], xb_ref[0]], axis=0)   # (R, Cin) bf16
    y1 = jnp.dot(x_all, w1_ref[...], preferred_element_type=jnp.float32)
    y1 = jnp.maximum(y1 + b1_ref[...], 0.0)                              # (R, P) f32

    # At the image top/bottom the conv2 halo is zero padding, not conv1(x).
    top_keep = (t > 0).astype(jnp.float32)
    bot_keep = (t < last_t).astype(jnp.float32)
    row = lax.broadcasted_iota(jnp.int32, (R, 1), 0)
    halo_scale = jnp.where(row < W, top_keep,
                           jnp.where(row >= R - W, bot_keep, 1.0))
    y1 = y1 * halo_scale

    # ---- conv2 (3x3, pad=1, stride=1) as 3 big-K matmuls ------------------
    # Flat +/-1 row roll gives the dw=+/-1 taps; the element that wraps across
    # a W boundary is always the masked col-0 / col-(W-1) element (= pad 0).
    col = lax.broadcasted_iota(jnp.int32, (R, 1), 0) % W
    y1_p = jnp.roll(jnp.where(col == 0, 0.0, y1), -1, axis=0)      # src col w+1 (kw=2)
    y1_m = jnp.roll(jnp.where(col == W - 1, 0.0, y1), 1, axis=0)   # src col w-1 (kw=0)

    # Cast each piece to bf16 BEFORE the lane concat (half the concat traffic).
    im2col = jnp.concatenate(
        [y1_p.astype(jnp.bfloat16), y1.astype(jnp.bfloat16),
         y1_m.astype(jnp.bfloat16)], axis=-1)                      # (R, 3P) bf16

    acc = jnp.dot(im2col[0:TW, :], w2_ref[0],
                  preferred_element_type=jnp.float32)              # dh = -1
    acc = acc + jnp.dot(im2col[W:W + TW, :], w2_ref[1],
                        preferred_element_type=jnp.float32)        # dh =  0
    acc = acc + jnp.dot(im2col[2 * W:2 * W + TW, :], w2_ref[2],
                        preferred_element_type=jnp.float32)        # dh = +1
    y2 = jnp.maximum(acc + b2_ref[...], 0.0)                       # (TW, P) f32

    # ---- conv3 (1x1) + bn3(bias) + identity residual + relu ---------------
    y3 = jnp.dot(y2.astype(jnp.bfloat16), w3_ref[...],
                 preferred_element_type=jnp.float32)
    y3 = y3 + b3_ref[...]                                          # (TW, 4P) f32
    out = jnp.maximum(y3 + xm_ref[0].astype(jnp.float32), 0.0)
    o_ref[0] = out.astype(o_ref.dtype)


def _pick_row_tile(H, W, cin, planes, budget_bytes):
    """Largest divisor TH of H whose per-step working set fits the budget.
    Re-derive per generation: larger budget on v5e/v6e (128 MiB VMEM),
    smaller on v7x (64 MiB)."""
    cout = 4 * planes
    best = 1
    for th in range(1, H + 1):
        if H % th:
            continue
        tw, r = th * W, (th + 2) * W
        step_bytes = (
            2 * 2 * (tw * cin + 2 * W * cin + tw * cout)   # bf16 x/out, double-buffered
            + r * planes * (3 * 4 + 3 * 2)                 # y1 + shifted copies (f32) + im2col (bf16)
            + tw * planes * 4 + tw * cout * 4)             # conv2 acc + y3 (f32)
        if step_bytes <= budget_bytes:
            best = th
    return best


def bottleneck_forward_nhwc(x_nhwc, kparams, *, row_tile=None,
                            vmem_budget_bytes=8 << 20,
                            vmem_limit_bytes=64 * 1024 * 1024):
    """x_nhwc: (N, H, W, Cin), any float dtype (cast to bf16 at the boundary).
    Returns (N, H, W, Cin) bf16.  Activations stay NHWC; no transposes here."""
    w1, w2r, w3, b1, b2, b3 = kparams
    N, H, W, Cin = x_nhwc.shape
    planes = w1.shape[1]
    cout = w3.shape[1]
    if cout != Cin:
        raise ValueError(
            "identity residual path requires inplanes == planes*4 "
            "(stride=1, downsample=None); got Cin=%d, planes*4=%d" % (Cin, cout))
    if W % 8 != 0:
        raise ValueError("W must be a multiple of 8 (sublane-aligned row pitch)")

    TH = row_tile if row_tile is not None else _pick_row_tile(
        H, W, Cin, planes, vmem_budget_bytes)
    if H % TH != 0:
        raise ValueError("row_tile must divide H")
    T = H // TH
    TW = TH * W

    x = x_nhwc.astype(jnp.bfloat16).reshape(N, H * W, Cin)    # flat spatial, lane-dense C

    kernel = functools.partial(_bottleneck_kernel, W=W)

    def const_spec(shape):
        nd = len(shape)
        return pl.BlockSpec(shape, lambda n, t, _nd=nd: (0,) * _nd)

    out = pl.pallas_call(
        kernel,
        out_shape=jax.ShapeDtypeStruct((N, H * W, Cin), jnp.bfloat16),
        grid_spec=pltpu.PrefetchScalarGridSpec(
            num_scalar_prefetch=0,
            grid=(N, T),
            in_specs=[
                # top halo: one image row (= one W-row block), clamped at image top
                pl.BlockSpec((1, W, Cin),
                             lambda n, t: (n, jnp.maximum(t * TH - 1, 0), 0)),
                # current row tile
                pl.BlockSpec((1, TW, Cin), lambda n, t: (n, t, 0)),
                # bottom halo: one image row, clamped at image bottom
                pl.BlockSpec((1, W, Cin),
                             lambda n, t: (n, jnp.minimum((t + 1) * TH, H - 1), 0)),
                const_spec(w1.shape), const_spec(w2r.shape), const_spec(w3.shape),
                const_spec(b1.shape), const_spec(b2.shape), const_spec(b3.shape),
            ],
            out_specs=pl.BlockSpec((1, TW, Cin), lambda n, t: (n, t, 0)),
        ),
        compiler_params=pltpu.CompilerParams(
            dimension_semantics=("parallel", "parallel"),
            vmem_limit_bytes=vmem_limit_bytes),
    )(x, x, x, w1, w2r, w3, b1, b2, b3)

    return out.reshape(N, H, W, Cin)


# --------------------------------------------------------------------------
# Parameter construction (deterministic, PyTorch shapes) + pure-JAX reference
# --------------------------------------------------------------------------
def make_params(key, inplanes, planes):
    ks = jax.random.split(key, 9)
    w1 = 0.1 * jax.random.normal(ks[0], (planes, inplanes, 1, 1), jnp.float32)
    w2 = 0.1 * jax.random.normal(ks[1], (planes, planes, 3, 3), jnp.float32)
    w3 = 0.1 * jax.random.normal(ks[2], (planes * 4, planes, 1, 1), jnp.float32)

    def bn(k, c):
        k1, k2, k3, k4 = jax.random.split(k, 4)
        gamma = 1.0 + 0.1 * jax.random.normal(k1, (c,), jnp.float32)
        beta = 0.1 * jax.random.normal(k2, (c,), jnp.float32)
        mean = 0.1 * jax.random.normal(k3, (c,), jnp.float32)
        var = jnp.abs(jax.random.normal(k4, (c,), jnp.float32)) + 0.5
        return gamma, beta, mean, var

    bn1 = bn(ks[3], planes)
    bn2 = bn(ks[4], planes)
    bn3 = bn(ks[5], planes * 4)
    return (w1, w2, w3, bn1, bn2, bn3)


def to_kernel_params(params):
    """Fold BN scales into the conv weights, pack conv2 for per-kh im2col,
    pre-cast all matmul weights to bf16.  Biases stay f32."""
    w1, w2, w3, bn1, bn2, bn3 = params

    def fold(bnp):
        gamma, beta, mean, var = bnp
        scale = gamma / jnp.sqrt(var + EPS)
        bias = beta - mean * scale
        return scale, bias

    s1, b1 = fold(bn1)
    s2, b2 = fold(bn2)
    s3, b3 = fold(bn3)

    # conv1: OIHW (P, Cin, 1, 1) -> (Cin, P), bn1 scale on output columns.
    kw1 = (jnp.transpose(w1[:, :, 0, 0], (1, 0)) * s1[None, :]).astype(jnp.bfloat16)

    # conv2: OIHW -> HWIO, then per-kh pack the K axis as [kw=2 | kw=1 | kw=0]
    # to match the [dw=+1 | dw=0 | dw=-1] column blocks of the im2col value.
    w2_hwio = jnp.transpose(w2, (2, 3, 1, 0))                     # (kh, kw, I, O)
    w2r = jnp.stack([
        jnp.concatenate([w2_hwio[kh, 2], w2_hwio[kh, 1], w2_hwio[kh, 0]], axis=0)
        for kh in range(3)], axis=0)                              # (3, 3P, P)
    w2r = (w2r * s2[None, None, :]).astype(jnp.bfloat16)

    # conv3: OIHW (4P, P, 1, 1) -> (P, 4P), bn3 scale on output columns.
    kw3 = (jnp.transpose(w3[:, :, 0, 0], (1, 0)) * s3[None, :]).astype(jnp.bfloat16)

    return (kw1, w2r, kw3, b1[None, :], b2[None, :], b3[None, :])


def reference_forward(x_nchw, params):
    w1, w2, w3, bn1, bn2, bn3 = params

    def conv(x, w, pad):
        return lax.conv_general_dilated(
            x, w, window_strides=(1, 1), padding=pad,
            dimension_numbers=('NCHW', 'OIHW', 'NCHW'))

    def bn(x, bnp):
        gamma, beta, mean, var = bnp
        sh = (1, -1, 1, 1)
        return ((x - mean.reshape(sh)) / jnp.sqrt(var.reshape(sh) + EPS)
                * gamma.reshape(sh) + beta.reshape(sh))

    out = jax.nn.relu(bn(conv(x_nchw, w1, 'VALID'), bn1))
    out = jax.nn.relu(bn(conv(out, w2, ((1, 1), (1, 1))), bn2))
    out = bn(conv(out, w3, 'VALID'), bn3)
    return jax.nn.relu(out + x_nchw)


if __name__ == "__main__":
    key = jax.random.PRNGKey(0)
    kx, kp = jax.random.split(key)

    planes = 8
    inplanes = planes * 4          # identity residual requires inplanes == 4*planes
    N, H, W = 2, 16, 16

    x_nchw = jax.random.normal(kx, (N, inplanes, H, W), jnp.float32)
    params = make_params(kp, inplanes, planes)
    kparams = to_kernel_params(params)

    # One-time layout/precision conversion in the TEST HARNESS only: a real
    # NHWC/bf16 network feeds the kernel directly with no transposes.
    x_nhwc = jnp.transpose(x_nchw, (0, 2, 3, 1)).astype(jnp.bfloat16)

    # row_tile=8 -> two row tiles per image: exercises both the interior-halo
    # and the image-boundary-halo paths at this small demo shape.
    out_nhwc = bottleneck_forward_nhwc(x_nhwc, kparams, row_tile=8)
    out_nhwc = jax.block_until_ready(out_nhwc)

    # The reference sees the same bf16-quantized input (bf16 activation I/O is
    # a deliberate format choice); comparison happens in f32 / NCHW.
    x_ref = jnp.transpose(x_nhwc.astype(jnp.float32), (0, 3, 1, 2))
    ref = jax.block_until_ready(reference_forward(x_ref, params))
    out = jnp.transpose(out_nhwc.astype(jnp.float32), (0, 3, 1, 2))

    # bf16 MXU operands / bf16 output (f32 accumulation) vs f32 reference.
    if not jnp.allclose(out, ref, rtol=2e-2, atol=2e-2):
        err = float(jnp.max(jnp.abs(out - ref)))
        raise AssertionError(
            "Pallas Bottleneck output mismatch vs reference (max abs err %.4g)" % err)

    print("KERNEL_OK")
</pallas_src>

<mosaic_0001>
module attributes {stable_mosaic.version = 11 : i64} {
  func.func @_bottleneck_kernel(%arg0: i32, %arg1: i32, %arg2: memref<1x16x32xbf16, #tpu.memory_space<vmem>>, %arg3: memref<1x128x32xbf16, #tpu.memory_space<vmem>>, %arg4: memref<1x16x32xbf16, #tpu.memory_space<vmem>>, %arg5: memref<32x8xbf16, #tpu.memory_space<vmem>>, %arg6: memref<3x24x8xbf16, #tpu.memory_space<vmem>>, %arg7: memref<8x32xbf16, #tpu.memory_space<vmem>>, %arg8: memref<1x8xf32, #tpu.memory_space<vmem>>, %arg9: memref<1x8xf32, #tpu.memory_space<vmem>>, %arg10: memref<1x32xf32, #tpu.memory_space<vmem>>, %arg11: memref<1x128x32xbf16, #tpu.memory_space<vmem>>) attributes {dimension_semantics = [#tpu.dimension_semantics<parallel>, #tpu.dimension_semantics<parallel>], iteration_bounds = array<i64: 2, 2>, scalar_prefetch = 0 : i64, scratch_operands = 0 : i64, tpu.core_type = #tpu.core_type<tc>, window_params = [{transform_indices = @transform_0, window_bounds = array<i64: 1, 16, 32>}, {transform_indices = @transform_1, window_bounds = array<i64: 1, 128, 32>}, {transform_indices = @transform_2, window_bounds = array<i64: 1, 16, 32>}, {pipeline_mode = #tpu.pipeline_mode<synchronous>, transform_indices = @transform_3, window_bounds = array<i64: 32, 8>}, {pipeline_mode = #tpu.pipeline_mode<synchronous>, transform_indices = @transform_4, window_bounds = array<i64: 3, 24, 8>}, {pipeline_mode = #tpu.pipeline_mode<synchronous>, transform_indices = @transform_5, window_bounds = array<i64: 8, 32>}, {pipeline_mode = #tpu.pipeline_mode<synchronous>, transform_indices = @transform_6, window_bounds = array<i64: 1, 8>}, {pipeline_mode = #tpu.pipeline_mode<synchronous>, transform_indices = @transform_7, window_bounds = array<i64: 1, 8>}, {pipeline_mode = #tpu.pipeline_mode<synchronous>, transform_indices = @transform_8, window_bounds = array<i64: 1, 32>}, {transform_indices = @transform_9, window_bounds = array<i64: 1, 128, 32>}]} {
    %c0 = arith.constant 0 : index
    %c0_0 = arith.constant 0 : index
    %c0_1 = arith.constant 0 : index
    %0 = vector.load %arg2[%c0, %c0_0, %c0_1] : memref<1x16x32xbf16, #tpu.memory_space<vmem>>, vector<1x16x32xbf16>
    %1 = vector.shape_cast %0 : vector<1x16x32xbf16> to vector<16x32xbf16>
    %c0_2 = arith.constant 0 : index
    %c0_3 = arith.constant 0 : index
    %c0_4 = arith.constant 0 : index
    %2 = vector.load %arg3[%c0_2, %c0_3, %c0_4] : memref<1x128x32xbf16, #tpu.memory_space<vmem>>, vector<1x128x32xbf16>
    %3 = vector.shape_cast %2 : vector<1x128x32xbf16> to vector<128x32xbf16>
    %c0_5 = arith.constant 0 : index
    %c0_6 = arith.constant 0 : index
    %c0_7 = arith.constant 0 : index
    %4 = vector.load %arg4[%c0_5, %c0_6, %c0_7] : memref<1x16x32xbf16, #tpu.memory_space<vmem>>, vector<1x16x32xbf16>
    %5 = vector.shape_cast %4 : vector<1x16x32xbf16> to vector<16x32xbf16>
    %6 = tpu.concatenate %1, %3, %5 in 0 : vector<16x32xbf16>, vector<128x32xbf16>, vector<16x32xbf16> -> vector<160x32xbf16>
    %c0_8 = arith.constant 0 : index
    %c0_9 = arith.constant 0 : index
    %7 = vector.load %arg5[%c0_8, %c0_9] : memref<32x8xbf16, #tpu.memory_space<vmem>>, vector<32x8xbf16>
    %cst = arith.constant dense<0.000000e+00> : vector<160x8xf32>
    %8 = tpu.matmul %6, %7, %cst {dimension_numbers = #tpu.dot_dimension_numbers<[1], [0], [0], [1], [0, 0, 1, 1], [], []>} : vector<160x32xbf16>, vector<32x8xbf16>, vector<160x8xf32> -> vector<160x8xf32>
    %c0_10 = arith.constant 0 : index
    %c0_11 = arith.constant 0 : index
    %9 = vector.load %arg8[%c0_10, %c0_11] : memref<1x8xf32, #tpu.memory_space<vmem>>, vector<1x8xf32>
    %10 = vector.broadcast %9 : vector<1x8xf32> to vector<160x8xf32>
    %11 = arith.addf %8, %10 : vector<160x8xf32>
    %cst_12 = arith.constant 0.000000e+00 : f32
    %12 = vector.broadcast %cst_12 : f32 to vector<160x8xf32>
    %13 = arith.maximumf %11, %12 : vector<160x8xf32>
    %c0_i32 = arith.constant 0 : i32
    %14 = arith.cmpi sgt, %arg1, %c0_i32 : i32
    %15 = arith.extui %14 : i1 to i32
    %16 = arith.sitofp %15 : i32 to f32
    %c1_i32 = arith.constant 1 : i32
    %17 = arith.cmpi slt, %arg1, %c1_i32 : i32
    %18 = arith.extui %17 : i1 to i32
    %19 = arith.sitofp %18 : i32 to f32
    %20 = tpu.iota {dimensions = array<i32: 0>} : vector<160x1xi32>
    %c16_i32 = arith.constant 16 : i32
    %21 = vector.broadcast %c16_i32 : i32 to vector<160x1xi32>
    %22 = arith.cmpi slt, %20, %21 : vector<160x1xi32>
    %c144_i32 = arith.constant 144 : i32
    %23 = vector.broadcast %c144_i32 : i32 to vector<160x1xi32>
    %24 = arith.cmpi sge, %20, %23 : vector<160x1xi32>
    %cst_13 = arith.constant 1.000000e+00 : f32
    %25 = vector.broadcast %19 : f32 to vector<160x1xf32>
    %26 = vector.broadcast %cst_13 : f32 to vector<160x1xf32>
    %27 = arith.select %24, %25, %26 : vector<160x1xi1>, vector<160x1xf32>
    %28 = vector.broadcast %16 : f32 to vector<160x1xf32>
    %29 = arith.select %22, %28, %27 : vector<160x1xi1>, vector<160x1xf32>
    %30 = vector.broadcast %29 : vector<160x1xf32> to vector<160x8xf32>
    %31 = arith.mulf %13, %30 : vector<160x8xf32>
    %32 = tpu.iota {dimensions = array<i32: 0>} : vector<160x1xi32>
    %c16_i32_14 = arith.constant 16 : i32
    %c0_i32_15 = arith.constant 0 : i32
    %33 = arith.cmpi eq, %c16_i32_14, %c0_i32_15 : i32
    %c1_i32_16 = arith.constant 1 : i32
    %34 = arith.select %33, %c1_i32_16, %c16_i32_14 : i32
    %35 = vector.broadcast %34 : i32 to vector<160x1xi32>
    %36 = arith.remsi %32, %35 : vector<160x1xi32>
    %c0_i32_17 = arith.constant 0 : i32
    %37 = vector.broadcast %c0_i32_17 : i32 to vector<160x1xi32>
    %38 = arith.cmpi ne, %36, %37 : vector<160x1xi32>
    %c0_i32_18 = arith.constant 0 : i32
    %39 = vector.broadcast %c0_i32_18 : i32 to vector<160x1xi32>
    %40 = arith.cmpi slt, %36, %39 : vector<160x1xi32>
    %c0_i32_19 = arith.constant 0 : i32
    %41 = arith.cmpi slt, %34, %c0_i32_19 : i32
    %42 = vector.broadcast %41 : i1 to vector<160x1xi1>
    %43 = vector.broadcast %42 : vector<160x1xi1> to vector<160x1xi1>
    %44 = arith.xori %40, %43 : vector<160x1xi1>
    %45 = arith.andi %44, %38 : vector<160x1xi1>
    %46 = vector.broadcast %34 : i32 to vector<160x1xi32>
    %47 = arith.addi %36, %46 : vector<160x1xi32>
    %48 = arith.select %45, %47, %36 : vector<160x1xi1>, vector<160x1xi32>
    %c0_i32_20 = arith.constant 0 : i32
    %49 = vector.broadcast %c0_i32_20 : i32 to vector<160x1xi32>
    %50 = arith.cmpi eq, %48, %49 : vector<160x1xi32>
    %cst_21 = arith.constant 0.000000e+00 : f32
    %51 = vector.shape_cast %50 : vector<160x1xi1> to vector<160x1xi1>
    %52 = vector.broadcast %51 : vector<160x1xi1> to vector<160x8xi1>
    %53 = vector.broadcast %cst_21 : f32 to vector<160x8xf32>
    %54 = arith.select %52, %53, %31 : vector<160x8xi1>, vector<160x8xf32>
    %55 = vector.extract_strided_slice %54 {offsets = [1, 0], sizes = [159, 8], strides = [1, 1]} : vector<160x8xf32> to vector<159x8xf32>
    %56 = vector.extract_strided_slice %54 {offsets = [0, 0], sizes = [1, 8], strides = [1, 1]} : vector<160x8xf32> to vector<1x8xf32>
    %57 = tpu.concatenate %55, %56 in 0 : vector<159x8xf32>, vector<1x8xf32> -> vector<160x8xf32>
    %c15_i32 = arith.constant 15 : i32
    %58 = vector.broadcast %c15_i32 : i32 to vector<160x1xi32>
    %59 = arith.cmpi eq, %48, %58 : vector<160x1xi32>
    %cst_22 = arith.constant 0.000000e+00 : f32
    %60 = vector.shape_cast %59 : vector<160x1xi1> to vector<160x1xi1>
    %61 = vector.broadcast %60 : vector<160x1xi1> to vector<160x8xi1>
    %62 = vector.broadcast %cst_22 : f32 to vector<160x8xf32>
    %63 = arith.select %61, %62, %31 : vector<160x8xi1>, vector<160x8xf32>
    %64 = vector.extract_strided_slice %63 {offsets = [159, 0], sizes = [1, 8], strides = [1, 1]} : vector<160x8xf32> to vector<1x8xf32>
    %65 = vector.extract_strided_slice %63 {offsets = [0, 0], sizes = [159, 8], strides = [1, 1]} : vector<160x8xf32> to vector<159x8xf32>
    %66 = tpu.concatenate %64, %65 in 0 : vector<1x8xf32>, vector<159x8xf32> -> vector<160x8xf32>
    %67 = arith.truncf %57 : vector<160x8xf32> to vector<160x8xbf16>
    %68 = arith.truncf %31 : vector<160x8xf32> to vector<160x8xbf16>
    %69 = arith.truncf %66 : vector<160x8xf32> to vector<160x8xbf16>
    %70 = tpu.concatenate %67, %68, %69 in 1 : vector<160x8xbf16>, vector<160x8xbf16>, vector<160x8xbf16> -> vector<160x24xbf16>
    %71 = vector.extract_strided_slice %70 {offsets = [0, 0], sizes = [128, 24], strides = [1, 1]} : vector<160x24xbf16> to vector<128x24xbf16>
    %c0_23 = arith.constant 0 : index
    %c0_24 = arith.constant 0 : index
    %c0_25 = arith.constant 0 : index
    %72 = vector.load %arg6[%c0_23, %c0_24, %c0_25] : memref<3x24x8xbf16, #tpu.memory_space<vmem>>, vector<1x24x8xbf16>
    %73 = vector.shape_cast %72 : vector<1x24x8xbf16> to vector<24x8xbf16>
    %cst_26 = arith.constant dense<0.000000e+00> : vector<128x8xf32>
    %74 = tpu.matmul %71, %73, %cst_26 {dimension_numbers = #tpu.dot_dimension_numbers<[1], [0], [0], [1], [0, 0, 1, 1], [], []>} : vector<128x24xbf16>, vector<24x8xbf16>, vector<128x8xf32> -> vector<128x8xf32>
    %75 = vector.extract_strided_slice %70 {offsets = [16, 0], sizes = [128, 24], strides = [1, 1]} : vector<160x24xbf16> to vector<128x24xbf16>
    %c1 = arith.constant 1 : index
    %c0_27 = arith.constant 0 : index
    %c0_28 = arith.constant 0 : index
    %76 = vector.load %arg6[%c1, %c0_27, %c0_28] : memref<3x24x8xbf16, #tpu.memory_space<vmem>>, vector<1x24x8xbf16>
    %77 = vector.shape_cast %76 : vector<1x24x8xbf16> to vector<24x8xbf16>
    %cst_29 = arith.constant dense<0.000000e+00> : vector<128x8xf32>
    %78 = tpu.matmul %75, %77, %cst_29 {dimension_numbers = #tpu.dot_dimension_numbers<[1], [0], [0], [1], [0, 0, 1, 1], [], []>} : vector<128x24xbf16>, vector<24x8xbf16>, vector<128x8xf32> -> vector<128x8xf32>
    %79 = arith.addf %74, %78 : vector<128x8xf32>
    %80 = vector.extract_strided_slice %70 {offsets = [32, 0], sizes = [128, 24], strides = [1, 1]} : vector<160x24xbf16> to vector<128x24xbf16>
    %c2 = arith.constant 2 : index
    %c0_30 = arith.constant 0 : index
    %c0_31 = arith.constant 0 : index
    %81 = vector.load %arg6[%c2, %c0_30, %c0_31] : memref<3x24x8xbf16, #tpu.memory_space<vmem>>, vector<1x24x8xbf16>
    %82 = vector.shape_cast %81 : vector<1x24x8xbf16> to vector<24x8xbf16>
    %cst_32 = arith.constant dense<0.000000e+00> : vector<128x8xf32>
    %83 = tpu.matmul %80, %82, %cst_32 {dimension_numbers = #tpu.dot_dimension_numbers<[1], [0], [0], [1], [0, 0, 1, 1], [], []>} : vector<128x24xbf16>, vector<24x8xbf16>, vector<128x8xf32> -> vector<128x8xf32>
    %84 = arith.addf %79, %83 : vector<128x8xf32>
    %c0_33 = arith.constant 0 : index
    %c0_34 = arith.constant 0 : index
    %85 = vector.load %arg9[%c0_33, %c0_34] : memref<1x8xf32, #tpu.memory_space<vmem>>, vector<1x8xf32>
    %86 = vector.broadcast %85 : vector<1x8xf32> to vector<128x8xf32>
    %87 = arith.addf %84, %86 : vector<128x8xf32>
    %cst_35 = arith.constant 0.000000e+00 : f32
    %88 = vector.broadcast %cst_35 : f32 to vector<128x8xf32>
    %89 = arith.maximumf %87, %88 : vector<128x8xf32>
    %90 = arith.truncf %89 : vector<128x8xf32> to vector<128x8xbf16>
    %c0_36 = arith.constant 0 : index
    %c0_37 = arith.constant 0 : index
    %91 = vector.load %arg7[%c0_36, %c0_37] : memref<8x32xbf16, #tpu.memory_space<vmem>>, vector<8x32xbf16>
    %cst_38 = arith.constant dense<0.000000e+00> : vector<128x32xf32>
    %92 = tpu.matmul %90, %91, %cst_38 {dimension_numbers = #tpu.dot_dimension_numbers<[1], [0], [0], [1], [0, 0, 1, 1], [], []>} : vector<128x8xbf16>, vector<8x32xbf16>, vector<128x32xf32> -> vector<128x32xf32>
    %c0_39 = arith.constant 0 : index
    %c0_40 = arith.constant 0 : index
    %93 = vector.load %arg10[%c0_39, %c0_40] : memref<1x32xf32, #tpu.memory_space<vmem>>, vector<1x32xf32>
    %94 = vector.broadcast %93 : vector<1x32xf32> to vector<128x32xf32>
    %95 = arith.addf %92, %94 : vector<128x32xf32>
    %c0_41 = arith.constant 0 : index
    %c0_42 = arith.constant 0 : index
    %c0_43 = arith.constant 0 : index
    %96 = vector.load %arg3[%c0_41, %c0_42, %c0_43] : memref<1x128x32xbf16, #tpu.memory_space<vmem>>, vector<1x128x32xbf16>
    %97 = vector.shape_cast %96 : vector<1x128x32xbf16> to vector<128x32xbf16>
    %98 = arith.extf %97 : vector<128x32xbf16> to vector<128x32xf32>
    %99 = arith.addf %95, %98 : vector<128x32xf32>
    %cst_44 = arith.constant 0.000000e+00 : f32
    %100 = vector.broadcast %cst_44 : f32 to vector<128x32xf32>
    %101 = arith.maximumf %99, %100 : vector<128x32xf32>
    %102 = arith.truncf %101 : vector<128x32xf32> to vector<128x32xbf16>
    %c0_45 = arith.constant 0 : index
    %c0_46 = arith.constant 0 : index
    %c0_47 = arith.constant 0 : index
    %103 = vector.load %arg11[%c0_45, %c0_46, %c0_47] : memref<1x128x32xbf16, #tpu.memory_space<vmem>>, vector<1x128x32xbf16>
    %104 = vector.shape_cast %103 : vector<1x128x32xbf16> to vector<128x32xbf16>
    %105 = vector.shape_cast %102 : vector<128x32xbf16> to vector<1x128x32xbf16>
    tpu.vector_store %arg11[%c0_45, %c0_46, %c0_47], %105 {strides = array<i32>} : memref<1x128x32xbf16, #tpu.memory_space<vmem>>, vector<1x128x32xbf16>,
    return
  }
  func.func @transform_0(%arg0: i32, %arg1: i32) -> (i32, i32, i32) {
    %c8_i32 = arith.constant 8 : i32
    %0 = arith.muli %arg1, %c8_i32 : i32
    %c1_i32 = arith.constant 1 : i32
    %1 = arith.subi %0, %c1_i32 : i32
    %c0_i32 = arith.constant 0 : i32
    %2 = arith.maxsi %1, %c0_i32 : i32
    %c0_i32_0 = arith.constant 0 : i32
    %c0_i32_1 = arith.constant 0 : i32
    return %arg0, %2, %c0_i32_0 : i32, i32, i32
  }
  func.func @transform_1(%arg0: i32, %arg1: i32) -> (i32, i32, i32) {
    %c0_i32 = arith.constant 0 : i32
    %c0_i32_0 = arith.constant 0 : i32
    return %arg0, %arg1, %c0_i32 : i32, i32, i32
  }
  func.func @transform_2(%arg0: i32, %arg1: i32) -> (i32, i32, i32) {
    %c1_i32 = arith.constant 1 : i32
    %0 = arith.addi %arg1, %c1_i32 : i32
    %c8_i32 = arith.constant 8 : i32
    %1 = arith.muli %0, %c8_i32 : i32
    %c15_i32 = arith.constant 15 : i32
    %2 = arith.minsi %1, %c15_i32 : i32
    %c0_i32 = arith.constant 0 : i32
    %c0_i32_0 = arith.constant 0 : i32
    return %arg0, %2, %c0_i32 : i32, i32, i32
  }
  func.func @transform_3(%arg0: i32, %arg1: i32) -> (i32, i32) {
    %c0_i32 = arith.constant 0 : i32
    %c0_i32_0 = arith.constant 0 : i32
    %c0_i32_1 = arith.constant 0 : i32
    return %c0_i32, %c0_i32_0 : i32, i32
  }
  func.func @transform_4(%arg0: i32, %arg1: i32) -> (i32, i32, i32) {
    %c0_i32 = arith.constant 0 : i32
    %c0_i32_0 = arith.constant 0 : i32
    %c0_i32_1 = arith.constant 0 : i32
    %c0_i32_2 = arith.constant 0 : i32
    return %c0_i32, %c0_i32_0, %c0_i32_1 : i32, i32, i32
  }
  func.func @transform_5(%arg0: i32, %arg1: i32) -> (i32, i32) {
    %c0_i32 = arith.constant 0 : i32
    %c0_i32_0 = arith.constant 0 : i32
    %c0_i32_1 = arith.constant 0 : i32
    return %c0_i32, %c0_i32_0 : i32, i32
  }
  func.func @transform_6(%arg0: i32, %arg1: i32) -> (i32, i32) {
    %c0_i32 = arith.constant 0 : i32
    %c0_i32_0 = arith.constant 0 : i32
    %c0_i32_1 = arith.constant 0 : i32
    return %c0_i32, %c0_i32_0 : i32, i32
  }
  func.func @transform_7(%arg0: i32, %arg1: i32) -> (i32, i32) {
    %c0_i32 = arith.constant 0 : i32
    %c0_i32_0 = arith.constant 0 : i32
    %c0_i32_1 = arith.constant 0 : i32
    return %c0_i32, %c0_i32_0 : i32, i32
  }
  func.func @transform_8(%arg0: i32, %arg1: i32) -> (i32, i32) {
    %c0_i32 = arith.constant 0 : i32
    %c0_i32_0 = arith.constant 0 : i32
    %c0_i32_1 = arith.constant 0 : i32
    return %c0_i32, %c0_i32_0 : i32, i32
  }
  func.func @transform_9(%arg0: i32, %arg1: i32) -> (i32, i32, i32) {
    %c0_i32 = arith.constant 0 : i32
    %c0_i32_0 = arith.constant 0 : i32
    return %arg0, %arg1, %c0_i32 : i32, i32, i32
  }
}

</mosaic_0001>

<bundles_post_ra>
// kernel: tpu_custom_call.1
= control target key start
LH: loop header
LB: loop body
LE: loop exit
PB: predicated region body
PF: predicated region fallthrough
CT: control target
= control target key end

     0   :  { %s2558_s30 = smov 0   ;;  %s2560_s10 = smov 0   ;;  %s3140_s0 = inlined_call_operand.vmem [shape: bf16[2,256,32], index: 0, kind: input, shape index: {}]   ;;  %s3141_s1 = inlined_call_operand.vmem [shape: bf16[2,256,32], index: 1, kind: input, shape index: {}]   ;;  %s3142_s2 = inlined_call_operand.vmem [shape: bf16[2,256,32], index: 2, kind: input, shape index: {}]   ;;  %s3143_s3 = inlined_call_operand.vmem [shape: bf16[32,8], index: 3, kind: input, shape index: {}]   ;;  %s3144_s4 = inlined_call_operand.vmem [shape: bf16[3,24,8], index: 4, kind: input, shape index: {}]   ;;  %s3145_s5 = inlined_call_operand.vmem [shape: bf16[8,32], index: 5, kind: input, shape index: {}]   ;;  %s3146_s6 = inlined_call_operand.vmem [shape: f32[1,8], index: 6, kind: input, shape index: {}]   ;;  %s3147_s7 = inlined_call_operand.vmem [shape: f32[1,8], index: 7, kind: input, shape index: {}]   ;;  %s3148_s8 = inlined_call_operand.vmem [shape: f32[1,32], index: 8, kind: input, shape index: {}]   ;;  %s3149_s9 = inlined_call_operand.vmem [shape: bf16[2,256,32], index: 9, kind: output, shape index: {}]  }
   0x1   :  { %s2562_s11 = smov 0   ;;  %s2564_s12 = smov 0  }
   0x2   :  { %s2566_s13 = smov 0  }
   0x3 LB: > { %s28_s14 = sadd.s32 1, %s2496_s11  ;;  %s31_s15 = sadd.s32 1, %s2500_s12  ;;  %s2504_s13 = sphi %s2566_s13, %s19_s13   ;;  %s2500_s12 = sphi %s2564_s12, %s3157_s12   ;;  %s2496_s11 = sphi %s2562_s11, %s3156_s11   ;;  %s2492_s10 = sphi %s2560_s10, %s3155_s10   ;;  %s2488_s30 = sphi %s2558_s30, %s3154_s30  }
   0x4   : > { %p29_p0 = scmp.ge.s32.totalorder %s28_s14, 2  ;;  %p2270_p1 = scmp.ge.s32.totalorder %s2504_s13, 1 }
   0x5   : > { %p374_p2 = scmp.lt.s32.totalorder %s2504_s13, 5 }
   0x6   : > { %s3159_s14 = smov (%p29_p0, %s28_s14), 0  ;;  %s3161_s15 = smov (!%p29_p0, %s31_s15), %s2500_s12 }
   0x7   : > { %p375_p3 = pnand %p2270_p1, %p374_p2  ;;  %p33_p4 = scmp.ge.s32.totalorder %s3161_s15, 2 }
   0x8   : > { %s2271_s18 = sshll.u32 (!%p375_p3), %s2488_s30, 3  ;;  %p449_p5 = scmp.lt.s32.totalorder (!%p375_p3), %s2492_s10, 1 }
   0x9   : > { %s3163_s15 = smov (%p33_p4, %s3161_s15), 0  ;;  %378 = sbr.rel (%p375_p3) target bundleno = 834 (0x342), region = 56 }
   0xa   : > { %s2272_s19 = sadd.s32 (!%p375_p3), 4294967295, %s2271_s18  ;;  %s2276_s23 = sshll.u32 (!%p375_p3), %s2488_s30, 4 }
   0xb   : > { %p446_p6 = scmp.gt.s32.totalorder (!%p375_p3), %s2272_s19, 0  ;;  %p465_p8 = scmp.lt.s32.totalorder (!%p375_p3), %s2276_s23, 31 }
   0xc   : > { %s2401_s16 = sadd.s32 (!%p375_p3), 8, %s2271_s18  ;;  %p701_p11 = scmp.gt.s32.totalorder (!%p375_p3), %s2488_s30, 0 }
   0xd   : > { %p474_p9 = scmp.lt.s32.totalorder (!%p375_p3), %s2401_s16, 15  ;;  %p704_p12 = scmp.lt.s32.totalorder (!%p375_p3), %s2488_s30, 1 }
   0xe   : > { %v2413_v0 = vld [vmem:[%s3143_s3 + $0x8] sm:$0xff]  ;;  %v2412_v1 = vld [vmem:[%s3143_s3] sm:$0xff]  ;;  %s3165_s10 = smov (!%p449_p5, %s2492_s10), 1  ;;  %s3167_s19 = smov (!%p446_p6, %s2272_s19), 0  ;;  %vm591_vm0 = vcmask 261120   ;;  %v707_v11 = vlaneseq  ;;  %vm1334_vm3 = vcmask 1040384  }
   0xf   : > { %628 = vmatpush.bf16.msra.mxu0 %v2413_v0  ;;  %s2273_s22 = sshll.u32 %s3167_s19, 1  ;;  %s2598_s24 = sshll.u32 %s3165_s10, 5  ;;  %v2636_v10 = vld [vmem:[%s3146_s6] ss:$0 sm:$0xff]  ;;  %vm1170_vm4 = vcmask 1046528  }
  0x10   : > { %p451_p7 = scmp.lt.s32.totalorder %s2273_s22, 31  ;;  %s3171_s23 = smov (!%p465_p8, %s2276_s23), 31  ;;  %v2640_v15 = vshrl.u32 %v707_v11, 7 }
  0x11   : > { %s468_s17 = sadd.s32 %s2598_s24, %s3171_s23  ;;  %s3173_s16 = smov (!%p474_p9, %s2401_s16), 15 }
  0x12   : > { %s3169_s22 = smov (!%p451_p7, %s2273_s22), 31  ;;  %s2606_s10 = sshll.u32 %s468_s17, 2  ;;  %v709_v16 = vadd.s32 8, %v2640_v15  ;;  %v834_v19 = vand.u32 15, %v2640_v15  ;;  %v710_v24 = vadd.s32 16, %v2640_v15  ;;  %v711_v42 = vadd.s32 24, %v2640_v15 }
  0x13   : > { %629 = vmatpush.bf16.msra.mxu0 %v2412_v1  ;;  %s454_s25 = sadd.s32 %s2598_s24, %s3169_s22  ;;  %s2280_s19 = sshll.u32 %s3173_s16, 1  ;;  %v712_v57 = vadd.s32 32, %v2640_v15 }
  0x14   : > { %s2275_s26 = sshll.u32 %s454_s25, 2  ;;  %p479_p10 = scmp.lt.s32.totalorder %s2280_s19, 31  ;;  %v841_v21 = vand.u32 15, %v709_v16  ;;  %vm2652_vm1 = vcmp.eq.s32.totalorder %v834_v19, 0  ;;  %v848_v29 = vand.u32 15, %v710_v24  ;;  %v855_v50 = vand.u32 15, %v711_v42 }
  0x15   : > { %s456_s29 = scalar_lea.vmem %s3140_s0, %s2275_s26  ;;  %s2612_s22 = scalar_lea.vmem %s3141_s1, %s2606_s10 }
  0x16   : > { %v2402_v2 = vld [vmem:[%s456_s29] sm:$0xff]  ;;  %s3175_s19 = smov (!%p479_p10, %s2280_s19), 31  ;;  %v2404_v4 = vld [vmem:[%s2612_s22 + $0x8] sm:$0xff]  ;;  %v2405_v5 = vld [vmem:[%s2612_s22 + $0x10] sm:$0xff]  ;;  %vm1233_vm2 = vcmp.eq.s32.totalorder %v841_v21, 15  ;;  %vm1072_vm5 = vcmp.eq.s32.totalorder %v848_v29, 0 }
  0x17   : > { %2334 = vmatmul.msk.bf16.vlgmr.msra.gmra.mxu0 %vm591_vm0, %v2402_v2  ;;  %s482_s18 = sadd.s32 %s2598_s24, %s3175_s19  ;;  %v2403_v3 = vld [vmem:[%s2612_s22] sm:$0xff]  ;;  %v2406_v6 = vld [vmem:[%s2612_s22 + $0x18] sm:$0xff]  ;;  %v2408_v8 = vld [vmem:[%s2612_s22 + $0x28] sm:$0xff]  ;;  %vm1235_vm6 = vcmp.eq.s32.totalorder %v855_v50, 15  ;;  %s2506_s24 = smov 8  }
  0x18   : > { %v2407_v7 = vld [vmem:[%s2612_s22 + $0x20] sm:$0xff]  ;;  %v2409_v9 = vld [vmem:[%s2612_s22 + $0x30] sm:$0xff]  ;;  %s702_s26 = scalar_select %p701_p11, 1, 0  ;;  %v2410_v12 = vld [vmem:[%s2612_s22 + $0x38] sm:$0xff] }
  0x19   : > { %s2282_s28 = sshll.u32 %s482_s18, 2  ;;  %s2507_s19 = smov 16  }
  0x1a   : > { %s703_s27 = scvt.s32.f32 %s702_s26  ;;  %s484_s17 = scalar_lea.vmem %s3142_s2, %s2282_s28 }
  0x1b   : > { %v2411_v32 = vld [vmem:[%s484_s17] sm:$0xff]  ;;  %s705_s20 = scalar_select %p704_p12, 1, 0 }
  0x1c   : > { %v789_v18 = vstv %s703_s27  ;;  %s3069_s28 = scalar_lea.vmem %s3149_s9, %s2606_s10 }
  0x1d   : > { %s706_s30 = scvt.s32.f32 %s705_s20 }
  0x27   : > { %2335 = vmatmul.msk.bf16.gmra.mxu0 %vm591_vm0, %v2403_v3  ;;  %v862_v3 = vand.u32 15, %v712_v57  ;;  %v715_v57 = vadd.s32 56, %v2640_v15 }
  0x29   : > { %vm1074_vm7 = vcmp.eq.s32.totalorder %v862_v3, 0 }
  0x37   : > { %2336 = vmatmul.msk.bf16.gmra.mxu0 %vm591_vm0, %v2404_v4 }
  0x47   : > { %2337 = vmatmul.msk.bf16.gmra.mxu0 %vm591_vm0, %v2405_v5 }
  0x57   : > { %2338 = vmatmul.msk.bf16.gmra.mxu0 %vm591_vm0, %v2406_v6 }
  0x67   : > { %2339 = vmatmul.msk.bf16.gmra.mxu0 %vm591_vm0, %v2407_v7 }
  0x77   : > { %2340 = vmatmul.msk.bf16.gmra.mxu0 %vm591_vm0, %v2408_v8 }
  0x87   : > { %2341 = vmatmul.msk.bf16.gmra.mxu0 %vm591_vm0, %v2409_v9 }
  0x94   : > { %v631_v13 = vpop.f32.mrf.mxu0 }
  0x95   : > { %v632_v14 = vadd.f32 %v2636_v10, %v631_v13 }
  0x97   : > { %2342 = vmatmul.msk.bf16.gmra.mxu0 %vm591_vm0, %v2410_v12  ;;  %v681_v17 = vmax.f32 %v632_v14, 0.0  ;;  %v713_v14 = vadd.s32 40, %v2640_v15 }
  0x99   : > { %v2645_v22 = vmul.f32 %v789_v18, %v681_v17  ;;  %v869_v24 = vand.u32 15, %v713_v14 }
  0x9b   : > { %v1414_v28 = vpack.c.bf16 %v2645_v22, %v2645_v22  ;;  %v1130_v30 = vsel %vm2652_vm1, 0.0, %v2645_v22  ;;  %v1335_v34 = vrot.slane %v2645_v22, 7  ;;  %vm1237_vm8 = vcmp.eq.s32.totalorder %v869_v24, 15 }
  0x9c   : > { %v633_v20 = vpop.f32.mrf.mxu0  ;;  %v2670_v41 = vrot.slane %v1130_v30, 1 }
  0x9d   : > { %v634_v23 = vadd.f32 %v2636_v10, %v633_v20  ;;  %v2666_v39 = vunpack.c.l.b16 %v1414_v28 }
  0x9f   : > { %v682_v25 = vmax.f32 %v634_v23, 0.0 }
  0xa1   : > { %v811_v27 = vmul.f32 %v789_v18, %v682_v25 }
  0xa3   : > { %v1293_v31 = vsel %vm1233_vm2, 0.0, %v811_v27  ;;  %v1415_v33 = vpack.c.bf16 %v811_v27, %v811_v27  ;;  %v1172_v35 = vrot.slane %v811_v27, 1 }
  0xa4   : > { %v1336_v36 = vrot.slane %v1293_v31, 7  ;;  %v636_v37 = vpop.f32.mrf.mxu0  ;;  %v714_v31 = vadd.s32 48, %v2640_v15 }
  0xa5   : > { %v637_v38 = vadd.f32 %v2636_v10, %v636_v37  ;;  %v2668_v40 = vunpack.c.l.b16 %v1415_v33  ;;  %v1173_v46 = vsel %vm1170_vm4, %v2670_v41, %v1172_v35 }
  0xa6   : > { %v2676_v43 = vsel %vm1334_vm3, %v1335_v34, %v1336_v36  ;;  %v1394_v52 = vpack.c.bf16 %v1173_v46, %v1173_v46 }
  0xa7   : > { %v683_v44 = vmax.f32 %v637_v38, 0.0  ;;  %2343 = vmatmul.msk.bf16.gmra.mxu0 %vm591_vm0, %v2411_v32  ;;  %v1544_v45 = vpack.c.b16 %v2668_v40, %v2666_v39 }
  0xa8   : > { %v2689_v61 = vunpack.c.l.b16 %v1394_v52 }
  0xa9   : > { %v1132_v47 = vsel %vm1072_vm5, 0.0, %v683_v44  ;;  %v1338_v48 = vrot.slane %v683_v44, 7  ;;  %v1416_v58 = vpack.c.bf16 %v683_v44, %v683_v44 }
  0xaa   : > { %v1174_v49 = vrot.slane %v1132_v47, 1  ;;  %v876_v47 = vand.u32 15, %v714_v31 }
  0xab   : > { %v1339_v51 = vsel %vm1334_vm3, %v1336_v36, %v1338_v48  ;;  %v2693_v5 = vunpack.c.l.b16 %v1416_v58 }
  0xac   : > { %v638_v53 = vpop.f32.mrf.mxu0  ;;  %v1175_v54 = vsel %vm1170_vm4, %v1172_v35, %v1174_v49  ;;  %v1436_v4 = vpack.c.bf16 %v1339_v51, %v1339_v51  ;;  %vm1076_vm9 = vcmp.eq.s32.totalorder %v876_v47, 0 }
  0xad   : > { %v639_v55 = vadd.f32 %v2636_v10, %v638_v53  ;;  %v1395_v56 = vpack.c.bf16 %v1175_v54, %v1175_v54 }
  0xae   : > { %v2703_v17 = vunpack.c.l.b16 %v1436_v4  ;;  %v883_v4 = vand.u32 15, %v715_v57 }
  0xaf   : > { %v684_v59 = vmax.f32 %v639_v55, 0.0  ;;  %v2687_v60 = vunpack.c.l.b16 %v1395_v56 }
  0xb0   : > { %vm1239_vm10 = vcmp.eq.s32.totalorder %v883_v4, 15 }
  0xb1   : > { %v1176_v62 = vrot.slane %v684_v59, 1  ;;  %v1295_v63 = vsel %vm1235_vm6, 0.0, %v684_v59  ;;  %v1417_v0 = vpack.c.bf16 %v684_v59, %v684_v59  ;;  %v1494_v1 = vpack.c.b16 %v2687_v60, %v2689_v61 }
  0xb2   : > { %v1340_v2 = vrot.slane %v1295_v63, 7 }
  0xb3   : > { %v2695_v6 = vunpack.c.l.b16 %v1417_v0  ;;  %v1177_v7 = vsel %vm1170_vm4, %v1174_v49, %v1176_v62 }
  0xb4   : > { %v641_v8 = vpop.f32.mrf.mxu0  ;;  %v1341_v9 = vsel %vm1334_vm3, %v1338_v48, %v1340_v2  ;;  %v1396_v26 = vpack.c.bf16 %v1177_v7, %v1177_v7 }
  0xb5   : > { %v642_v11 = vadd.f32 %v2636_v10, %v641_v8  ;;  %v1437_v12 = vpack.c.bf16 %v1341_v9, %v1341_v9  ;;  %v1545_v13 = vpack.c.b16 %v2695_v6, %v2693_v5 }
  0xb6   : > { %v2713_v35 = vunpack.c.l.b16 %v1396_v26 }
  0xb7   : > { %v685_v16 = vmax.f32 %v642_v11, 0.0  ;;  %v2705_v18 = vunpack.c.l.b16 %v1437_v12 }
  0xb9   : > { %v1134_v19 = vsel %vm1074_vm7, 0.0, %v685_v16  ;;  %v1342_v20 = vrot.slane %v685_v16, 7  ;;  %v1615_v21 = vpack.c.b16 %v2705_v18, %v2703_v17  ;;  %v1418_v32 = vpack.c.bf16 %v685_v16, %v685_v16  ;;  %v1698_v18 = vld [vmem:[%s3144_s4 + $0x8] sm:$0xf] }
  0xba   : > { %v1178_v23 = vrot.slane %v1134_v19, 1  ;;  %v716_v16 = vadd.s32 64, %v2640_v15 }
  0xbb   : > { %v1343_v25 = vsel %vm1334_vm3, %v1340_v2, %v1342_v20  ;;  %v2719_v49 = vunpack.c.l.b16 %v1418_v32 }
  0xbc   : > { %v643_v27 = vpop.f32.mrf.mxu0  ;;  %v1179_v28 = vsel %vm1170_vm4, %v1176_v62, %v1178_v23  ;;  %v1438_v48 = vpack.c.bf16 %v1343_v25, %v1343_v25 }
  0xbd   : > { %v644_v29 = vadd.f32 %v2636_v10, %v643_v27  ;;  %v1397_v30 = vpack.c.bf16 %v1179_v28, %v1179_v28  ;;  %v890_v28 = vand.u32 15, %v716_v16 }
  0xbe   : > { %v2731_v59 = vunpack.c.l.b16 %v1438_v48 }
  0xbf   : > { %v686_v33 = vmax.f32 %v644_v29, 0.0  ;;  %v2715_v36 = vunpack.c.l.b16 %v1397_v30  ;;  %vm1078_vm11 = vcmp.eq.s32.totalorder %v890_v28, 0 }
  0xc1   : > { %v1180_v37 = vrot.slane %v686_v33, 1  ;;  %v1297_v38 = vsel %vm1237_vm8, 0.0, %v686_v33  ;;  %v1419_v42 = vpack.c.bf16 %v686_v33, %v686_v33 }
  0xc2   : > { %v1344_v46 = vrot.slane %v1297_v38, 7  ;;  %v717_v38 = vadd.s32 72, %v2640_v15 }
  0xc3   : > { %v2721_v50 = vunpack.c.l.b16 %v1419_v42  ;;  %v1181_v51 = vsel %vm1170_vm4, %v1178_v23, %v1180_v37 }
  0xc4   : > { %v646_v52 = vpop.f32.mrf.mxu0  ;;  %v1345_v53 = vsel %vm1334_vm3, %v1342_v20, %v1344_v46  ;;  %v1398_v8 = vpack.c.bf16 %v1181_v51, %v1181_v51 }
  0xc5   : > { %v647_v54 = vadd.f32 %v2636_v10, %v646_v52  ;;  %v1439_v55 = vpack.c.bf16 %v1345_v53, %v1345_v53  ;;  %v1546_v56 = vpack.c.b16 %v2721_v50, %v2719_v49  ;;  %v897_v53 = vand.u32 15, %v717_v38  ;;  %v2346_v50 = vld [vmem:[%s3144_s4 + $0x14] sm:$0xf] }
  0xc6   : > { %v2747_v23 = vunpack.c.l.b16 %v1398_v8 }
  0xc7   : > { %v2729_v58 = vmax.f32 %v647_v54, 0.0  ;;  %v2733_v62 = vunpack.c.l.b16 %v1439_v55  ;;  %vm1241_vm12 = vcmp.eq.s32.totalorder %v897_v53, 15  ;;  %v719_v53 = vadd.s32 88, %v2640_v15 }
  0xc9   : > { %v1136_v63 = vsel %vm1076_vm9, 0.0, %v2729_v58  ;;  %v1346_v0 = vrot.slane %v2729_v58, 7  ;;  %v1616_v2 = vpack.c.b16 %v2733_v62, %v2731_v59  ;;  %vm1675_vm9 = vcmask 130048  }
  0xca   : > { %v1182_v3 = vrot.slane %v1136_v63, 1 }
  0xcb   : > { %v1347_v7 = vsel %vm1334_vm3, %v1344_v46, %v1346_v0 }
  0xcc   : > { %v648_v9 = vpop.f32.mrf.mxu0  ;;  %v1183_v11 = vsel %vm1170_vm4, %v1180_v37, %v1182_v3  ;;  %v1440_v29 = vpack.c.bf16 %v1347_v7, %v1347_v7 }
  0xcd   : > { %v649_v12 = vadd.f32 %v2636_v10, %v648_v9  ;;  %v1399_v14 = vpack.c.bf16 %v1183_v11, %v1183_v11 }
  0xce   : > { %v2757_v46 = vunpack.c.l.b16 %v1440_v29 }
  0xcf   : > { %v2743_v19 = vmax.f32 %v649_v12, 0.0  ;;  %v2745_v20 = vunpack.c.l.b16 %v1399_v14 }
  0xd1   : > { %v1184_v24 = vrot.slane %v2743_v19, 1  ;;  %v1299_v25 = vsel %vm1239_vm10, 0.0, %v2743_v19  ;;  %v1496_v26 = vpack.c.b16 %v2745_v20, %v2747_v23  ;;  %v1421_v40 = vpack.c.bf16 %v2743_v19, %v2743_v19 }
  0xd2   : > { %v1348_v27 = vrot.slane %v1299_v25, 7  ;;  %vm1712_vm10 = vcmask 195584  }
  0xd3   : > { %v1185_v30 = vsel %vm1170_vm4, %v1182_v3, %v1184_v24  ;;  %v718_v3 = vadd.s32 80, %v2640_v15 }
  0xd4   : > { %v651_v31 = vpop.f32.mrf.mxu0  ;;  %v1349_v32 = vsel %vm1334_vm3, %v1346_v0, %v1348_v27  ;;  %v1400_v54 = vpack.c.bf16 %v1185_v30, %v1185_v30 }
  0xd5   : > { %v652_v33 = vadd.f32 %v2636_v10, %v651_v31  ;;  %v1441_v37 = vpack.c.bf16 %v1349_v32, %v1349_v32  ;;  %v904_v28 = vand.u32 15, %v718_v3 }
  0xd6   : > { %v2766_v8 = vunpack.c.l.b16 %v1400_v54 }
  0xd7   : > { %v689_v42 = vmax.f32 %v652_v33, 0.0  ;;  %v2759_v47 = vunpack.c.l.b16 %v1441_v37  ;;  %vm1080_vm13 = vcmp.eq.s32.totalorder %v904_v28, 0  ;;  %v720_v28 = vadd.s32 96, %v2640_v15 }
  0xd9   : > { %v1138_v48 = vsel %vm1078_vm11, 0.0, %v689_v42  ;;  %v1617_v51 = vpack.c.b16 %v2759_v47, %v2757_v46  ;;  %v1422_v7 = vpack.c.bf16 %v689_v42, %v689_v42  ;;  %v1350_v11 = vrot.slane %v689_v42, 7  ;;  %v2373_v47 = vld [vmem:[%s3144_s4 + $0x20] sm:$0xf] }
  0xda   : > { %v1186_v52 = vrot.slane %v1138_v48, 1  ;;  %vm2117_vm11 = vcmask 257024  }
  0xdb   : > { %v1532_v29 = vunpack.c.l.b16 %v1422_v7  ;;  %v1351_v33 = vsel %vm1334_vm3, %v1348_v27, %v1350_v11 }
  0xdc   : > { %v653_v55 = vpop.f32.mrf.mxu0  ;;  %v1187_v57 = vsel %vm1170_vm4, %v1184_v24, %v1186_v52 }
  0xdd   : > { %v654_v63 = vadd.f32 %v2636_v10, %v653_v55  ;;  %v1401_v0 = vpack.c.bf16 %v1187_v57, %v1187_v57  ;;  %v1442_v55 = vpack.c.bf16 %v1351_v33, %v1351_v33 }
  0xdf   : > { %v690_v4 = vmax.f32 %v654_v63, 0.0  ;;  %v2768_v9 = vunpack.c.l.b16 %v1401_v0  ;;  %v911_v0 = vand.u32 15, %v719_v53  ;;  %v1602_v3 = vunpack.c.l.b16 %v1442_v55 }
  0xe0   : > { %v918_v53 = vand.u32 15, %v720_v28 }
  0xe1   : > { %v1188_v12 = vrot.slane %v690_v4, 1  ;;  %v1301_v14 = vsel %vm1241_vm12, 0.0, %v690_v4  ;;  %v1423_v16 = vpack.c.bf16 %v690_v4, %v690_v4  ;;  %vm1243_vm14 = vcmp.eq.s32.totalorder %v911_v0, 15 }
  0xe2   : > { %v1352_v24 = vrot.slane %v1301_v14, 7  ;;  %vm1082_vm15 = vcmp.eq.s32.totalorder %v918_v53, 0 }
  0xe3   : > { %v1533_v30 = vunpack.c.l.b16 %v1423_v16  ;;  %v1189_v31 = vsel %vm1170_vm4, %v1186_v52, %v1188_v12 }
  0xe4   : > { %v656_v32 = vpop.f32.mrf.mxu0  ;;  %v1353_v37 = vsel %vm1334_vm3, %v1350_v11, %v1352_v24  ;;  %v1402_v27 = vpack.c.bf16 %v1189_v31, %v1189_v31 }
  0xe5   : > { %v657_v38 = vadd.f32 %v2636_v10, %v656_v32  ;;  %v1548_v42 = vpack.c.b16 %v1533_v30, %v1532_v29  ;;  %v1443_v48 = vpack.c.bf16 %v1353_v37, %v1353_v37 }
  0xe6   : > { %v2784_v33 = vunpack.c.l.b16 %v1402_v27 }
  0xe7   : > { %v691_v54 = vmax.f32 %v657_v38, 0.0  ;;  %1562 = vrot.lane.b32.xlu0 %v1548_v42, %s2506_s24  ;;  %v1603_v63 = vunpack.c.l.b16 %v1443_v48 }
  0xe9   : > { %v1140_v57 = vsel %vm1080_vm13, 0.0, %v691_v54  ;;  %v1618_v14 = vpack.c.b16 %v1603_v63, %v1602_v3  ;;  %v1424_v30 = vpack.c.bf16 %v691_v54, %v691_v54  ;;  %v1354_v31 = vrot.slane %v691_v54, 7 }
  0xea   : > { %v1190_v52 = vrot.slane %v1140_v57, 1 }
  0xeb   : > { %v1534_v55 = vunpack.c.l.b16 %v1424_v30  ;;  %v1355_v3 = vsel %vm1334_vm3, %v1352_v24, %v1354_v31 }
  0xec   : > { %v658_v4 = vpop.f32.mrf.mxu0  ;;  %v1191_v7 = vsel %vm1170_vm4, %v1188_v12, %v1190_v52 }
  0xed   : > { %v659_v11 = vadd.f32 %v2636_v10, %v658_v4  ;;  %v1403_v16 = vpack.c.bf16 %v1191_v7, %v1191_v7 }
  0xef   : > { %v692_v29 = vmax.f32 %v659_v11, 0.0  ;;  %1632 = vrot.lane.b32.xlu0 %v1618_v14, %s2507_s19  ;;  %v2782_v32 = vunpack.c.l.b16 %v1403_v16  ;;  %v721_v11 = vadd.s32 104, %v2640_v15  ;;  %v1444_v16 = vpack.c.bf16 %v1355_v3, %v1355_v3 }
  0xf1   : > { %v1192_v37 = vrot.slane %v692_v29, 1  ;;  %v1303_v38 = vsel %vm1243_vm14, 0.0, %v692_v29  ;;  %v1425_v12 = vpack.c.bf16 %v692_v29, %v692_v29  ;;  %v1498_v42 = vpack.c.b16 %v2782_v32, %v2784_v33 }
  0xf2   : > { %v1356_v48 = vrot.slane %v1303_v38, 7  ;;  %v1604_v38 = vunpack.c.l.b16 %v1444_v16 }
  0xf3   : > { %v1535_v57 = vunpack.c.l.b16 %v1425_v12  ;;  %v1193_v63 = vsel %vm1170_vm4, %v1190_v52, %v1192_v37  ;;  %v925_v52 = vand.u32 15, %v721_v11 }
  0xf4   : > { %v661_v0 = vpop.f32.mrf.mxu0  ;;  %v1357_v4 = vsel %vm1334_vm3, %v1354_v31, %v1356_v48  ;;  %v1404_v12 = vpack.c.bf16 %v1193_v63, %v1193_v63 }
  0xf5   : > { %v662_v27 = vadd.f32 %v2636_v10, %v661_v0  ;;  %v1549_v54 = vpack.c.b16 %v1535_v57, %v1534_v55  ;;  %v1445_v7 = vpack.c.bf16 %v1357_v4, %v1357_v4  ;;  %vm1245_vm0 = vcmp.eq.s32.totalorder %v925_v52, 15 }
  0xf6   : > { %v722_v0 = vadd.s32 112, %v2640_v15 }
  0xf7   : > { %v693_v14 = vmax.f32 %v662_v27, 0.0  ;;  %1564 = vrot.lane.b32.xlu1 %v1549_v54, %s2506_s24  ;;  %v1605_v29 = vunpack.c.l.b16 %v1445_v7  ;;  %v2800_v54 = vunpack.c.l.b16 %v1404_v12 }
  0xf9   : > { %v1142_v28 = vsel %vm1082_vm15, 0.0, %v693_v14  ;;  %v1358_v24 = vrot.slane %v693_v14, 7  ;;  %v1619_v57 = vpack.c.b16 %v1605_v29, %v1604_v38  ;;  %v1426_v4 = vpack.c.bf16 %v693_v14, %v693_v14 }
  0xfa   : > { %v1194_v30 = vrot.slane %v1142_v28, 1  ;;  %v932_v28 = vand.u32 15, %v722_v0 }
  0xfb   : > { %v1359_v63 = vsel %vm1334_vm3, %v1356_v48, %v1358_v24  ;;  %v1536_v29 = vunpack.c.l.b16 %v1426_v4 }
  0xfc   : > { %v663_v25 = vpop.f32.mrf.mxu0  ;;  %v1195_v31 = vsel %vm1170_vm4, %v1192_v37, %v1194_v30  ;;  %v1446_v14 = vpack.c.bf16 %v1359_v63, %v1359_v63  ;;  %vm1084_vm1 = vcmp.eq.s32.totalorder %v932_v28, 0 }
  0xfd   : > { %v664_v55 = vadd.f32 %v2636_v10, %v663_v25  ;;  %v1405_v53 = vpack.c.bf16 %v1195_v31, %v1195_v31 }
  0xff   : > { %v694_v27 = vmax.f32 %v664_v55, 0.0  ;;  %1634 = vrot.lane.b32.xlu1 %v1619_v57, %s2507_s19  ;;  %v2798_v3 = vunpack.c.l.b16 %v1405_v53  ;;  %v723_v53 = vadd.s32 120, %v2640_v15 }
 0x101   : > { %v1196_v7 = vrot.slane %v694_v27, 1  ;;  %v1305_v11 = vsel %vm1245_vm0, 0.0, %v694_v27  ;;  %v1427_v37 = vpack.c.bf16 %v694_v27, %v694_v27  ;;  %v1499_v25 = vpack.c.b16 %v2798_v3, %v2800_v54 }
 0x102   : > { %v1360_v16 = vrot.slane %v1305_v11, 7  ;;  %v1606_v11 = vunpack.c.l.b16 %v1446_v14  ;;  %v939_v44 = vand.u32 15, %v723_v53 }
 0x103   : > { %v1537_v52 = vunpack.c.l.b16 %v1427_v37  ;;  %v1197_v38 = vsel %vm1170_vm4, %v1194_v30, %v1196_v7 }
 0x104   : > { %v666_v31 = vpop.f32.mrf.mxu0  ;;  %v1361_v55 = vsel %vm1334_vm3, %v1358_v24, %v1360_v16  ;;  %v1406_v30 = vpack.c.bf16 %v1197_v38, %v1197_v38  ;;  %vm1247_vm2 = vcmp.eq.s32.totalorder %v939_v44, 15 }
 0x105   : > { %v667_v12 = vadd.f32 %v2636_v10, %v666_v31  ;;  %v1550_v57 = vpack.c.b16 %v1537_v52, %v1536_v29  ;;  %v1447_v48 = vpack.c.bf16 %v1361_v55, %v1361_v55  ;;  %v724_v52 = vadd.s32 128, %v2640_v15 }
 0x106   : > { %v2814_v14 = vunpack.c.l.b16 %v1406_v30 }
 0x107   : > { %v695_v27 = vmax.f32 %v667_v12, 0.0  ;;  %1566 = vrot.lane.b32.xlu0 %v1550_v57, %s2506_s24  ;;  %v1607_v0 = vunpack.c.l.b16 %v1447_v48 }
 0x109   : > { %v1144_v4 = vsel %vm1084_vm1, 0.0, %v695_v27  ;;  %v1620_v37 = vpack.c.b16 %v1607_v0, %v1606_v11  ;;  %v1428_v12 = vpack.c.bf16 %v695_v27, %v695_v27  ;;  %v1362_v48 = vrot.slane %v695_v27, 7 }
 0x10a   : > { %v1198_v63 = vrot.slane %v1144_v4, 1  ;;  %v946_v4 = vand.u32 15, %v724_v52  ;;  %v725_v52 = vadd.s32 136, %v2640_v15 }
 0x10b   : > { %1636 = vrot.lane.b32.xlu1 %v1620_v37, %s2507_s19  ;;  %v1538_v44 = vunpack.c.l.b16 %v1428_v12  ;;  %v1363_v27 = vsel %vm1334_vm3, %v1360_v16, %v1362_v48  ;;  %v1420_v16 = vpack.c.bf16 %v2729_v58, %v2729_v58 }
 0x10c   : > { %v668_v24 = vpop.f32.mrf.mxu0  ;;  %v1199_v31 = vsel %vm1170_vm4, %v1196_v7, %v1198_v63  ;;  %vm1086_vm5 = vcmp.eq.s32.totalorder %v946_v4, 0  ;;  %v1448_v39 = vpack.c.bf16 %v1363_v27, %v1363_v27 }
 0x10d   : > { %v669_v29 = vadd.f32 %v2636_v10, %v668_v24  ;;  %v1407_v28 = vpack.c.bf16 %v1199_v31, %v1199_v31  ;;  %v1530_v58 = vunpack.c.l.b16 %v1420_v16 }
 0x10f   : > { %v696_v55 = vmax.f32 %v669_v29, 0.0  ;;  %v2816_v57 = vunpack.c.l.b16 %v1407_v28 }
 0x111   : > { %v1200_v53 = vrot.slane %v696_v55, 1  ;;  %v1307_v11 = vsel %vm1247_vm2, 0.0, %v696_v55  ;;  %v1429_v0 = vpack.c.bf16 %v696_v55, %v696_v55  ;;  %v1500_v38 = vpack.c.b16 %v2816_v57, %v2814_v14 }
 0x112   : > { %v1364_v7 = vrot.slane %v1307_v11, 7 }
 0x113   : > { %1554 = vrot.lane.b32.xlu1 %v1544_v45, %s2506_s24  ;;  %v1539_v37 = vunpack.c.l.b16 %v1429_v0  ;;  %v1201_v30 = vsel %vm1170_vm4, %v1198_v63, %v1200_v53  ;;  %v1608_v0 = vunpack.c.l.b16 %v1448_v39 }
 0x114   : > { %v671_v24 = vpop.f32.mrf.mxu0  ;;  %v1365_v31 = vsel %vm1334_vm3, %v1362_v48, %v1364_v7  ;;  %v953_v48 = vand.u32 15, %v725_v52  ;;  %v1408_v4 = vpack.c.bf16 %v1201_v30, %v1201_v30  ;;  %v726_v30 = vadd.s32 144, %v2640_v15 }
 0x115   : > { %v672_v29 = vadd.f32 %v2636_v10, %v671_v24  ;;  %v1551_v28 = vpack.c.b16 %v1539_v37, %v1538_v44  ;;  %v1449_v55 = vpack.c.bf16 %v1365_v31, %v1365_v31  ;;  %v1531_v24 = vunpack.c.l.b16 %v1421_v40 }
 0x116   : > { %vm1249_vm6 = vcmp.eq.s32.totalorder %v953_v48, 15  ;;  %v2844_v62 = vunpack.c.l.b16 %v1408_v4 }
 0x117   : > { %v697_v11 = vmax.f32 %v672_v29, 0.0  ;;  %1568 = vrot.lane.b32.xlu2 %v1551_v28, %s2506_s24  ;;  %v1609_v63 = vunpack.c.l.b16 %v1449_v55 }
 0x119   : > { %v1146_v45 = vsel %vm1086_vm5, 0.0, %v697_v11  ;;  %v1366_v44 = vrot.slane %v697_v11, 7  ;;  %v1621_v31 = vpack.c.b16 %v1609_v63, %v1608_v0  ;;  %v1430_v28 = vpack.c.bf16 %v697_v11, %v697_v11 }
 0x11a   : > { %v1202_v12 = vrot.slane %v1146_v45, 1 }
 0x11b   : > { %1628 = vrot.lane.b32.xlu1 %v1616_v2, %s2507_s19  ;;  %v1547_v2 = vpack.c.b16 %v1531_v24, %v1530_v58  ;;  %v1540_v11 = vunpack.c.l.b16 %v1430_v28  ;;  %v727_v28 = vadd.s32 152, %v2640_v15 }
 0x11c   : > { %v673_v37 = vpop.f32.mrf.mxu0  ;;  %v1203_v19 = vsel %vm1170_vm4, %v1200_v53, %v1202_v12  ;;  %v1367_v53 = vsel %vm1334_vm3, %v1364_v7, %v1366_v44 }
 0x11d   : > { %v674_v27 = vadd.f32 %v2636_v10, %v673_v37  ;;  %v1409_v29 = vpack.c.bf16 %v1203_v19, %v1203_v19  ;;  %v1450_v48 = vpack.c.bf16 %v1367_v53, %v1367_v53  ;;  %v960_v37 = vand.u32 15, %v726_v30 }
 0x11f   : > { %v698_v55 = vmax.f32 %v674_v27, 0.0  ;;  %1638 = vrot.lane.b32.xlu2 %v1621_v31, %s2507_s19  ;;  %v2842_v59 = vunpack.c.l.b16 %v1409_v29  ;;  %v768_v31 = vstv %s706_s30  ;;  %v1610_v58 = vunpack.c.l.b16 %v1450_v48 }
 0x120   : > { %vm1088_vm7 = vcmp.eq.s32.totalorder %v960_v37, 0 }
 0x121   : > { %v1204_v52 = vrot.slane %v698_v55, 1  ;;  %v1309_v39 = vsel %vm1249_vm6, 0.0, %v698_v55  ;;  %v1431_v40 = vpack.c.bf16 %v698_v55, %v698_v55  ;;  %v1501_v45 = vpack.c.b16 %v2842_v59, %v2844_v62 }
 0x122   : > { %v1368_v63 = vrot.slane %v1309_v39, 7  ;;  %v967_v39 = vand.u32 15, %v727_v28 }
 0x123   : > { %1560 = vrot.lane.b32.xlu1 %v1547_v2, %s2506_s24  ;;  %v1541_v16 = vunpack.c.l.b16 %v1431_v40  ;;  %v1205_v0 = vsel %vm1170_vm4, %v1202_v12, %v1204_v52 }
 0x124   : > { %v676_v4 = vpop.f32.mrf.mxu0  ;;  %v1369_v24 = vsel %vm1334_vm3, %v1366_v44, %v1368_v63  ;;  %vm1251_vm8 = vcmp.eq.s32.totalorder %v967_v39, 15 }
 0x125   : > { %v677_v7 = vadd.f32 %v2636_v10, %v676_v4  ;;  %v1552_v19 = vpack.c.b16 %v1541_v16, %v1540_v11  ;;  %v1451_v27 = vpack.c.bf16 %v1369_v24, %v1369_v24  ;;  %v1410_v11 = vpack.c.bf16 %v1205_v0, %v1205_v0 }
 0x126   : > { %v1435_v0 = vpack.c.bf16 %v2676_v43, %v2676_v43 }
 0x127   : > { %v699_v29 = vmax.f32 %v677_v7, 0.0  ;;  %1570 = vrot.lane.b32.xlu2 %v1552_v19, %s2506_s24  ;;  %v1611_v55 = vunpack.c.l.b16 %v1451_v27  ;;  %v2859_v7 = vunpack.c.l.b16 %v1410_v11 }
 0x129   : > { %v828_v2 = vmul.f32 %v768_v31, %v699_v29  ;;  %v1622_v53 = vpack.c.b16 %v1611_v55, %v1610_v58 }
 0x12b   : > { %v1148_v12 = vsel %vm1088_vm7, 0.0, %v828_v2  ;;  %1640 = vrot.lane.b32.xlu0 %v1622_v53, %s2507_s19  ;;  %v1370_v16 = vrot.slane %v828_v2, 7  ;;  %v1432_v58 = vpack.c.bf16 %v828_v2, %v828_v2 }
 0x12c   : > { %v1206_v30 = vrot.slane %v1148_v12, 1  ;;  %v678_v44 = vpop.f32.mrf.mxu0 }
 0x12d   : > { %v679_v40 = vadd.f32 %v2636_v10, %v678_v44  ;;  %v1371_v19 = vsel %vm1334_vm3, %v1368_v63, %v1370_v16  ;;  %v1708_v44 = vunpack.c.l.b16 %v2346_v50 }
 0x12e   : > { %v1207_v4 = vsel %vm1170_vm4, %v1204_v52, %v1206_v30 }
 0x12f   : > { %v700_v24 = vmax.f32 %v679_v40, 0.0  ;;  %v1411_v48 = vpack.c.bf16 %v1207_v4, %v1207_v4 }
 0x131   : > { %v829_v37 = vmul.f32 %v768_v31, %v700_v24  ;;  %v2861_v15 = vunpack.c.l.b16 %v1411_v48  ;;  %v1452_v31 = vpack.c.bf16 %v1371_v19, %v1371_v19 }
 0x133   : > { %v1208_v27 = vrot.slane %v829_v37, 1  ;;  %v1311_v29 = vsel %vm1251_vm8, 0.0, %v829_v37  ;;  %1558 = vrot.lane.b32.xlu0 %v1546_v56, %s2506_s24  ;;  %v1502_v10 = vpack.c.b16 %v2861_v15, %v2859_v7  ;;  %v1433_v2 = vpack.c.bf16 %v829_v37, %v829_v37 }
 0x134   : > { %v1313_v52 = vrot.slane %v1311_v29, 7  ;;  %v1612_v40 = vunpack.c.l.b16 %v1452_v31  ;;  %v1854_v31 = vunpack.c.l.b16 %v2373_v47 }
 0x135   : > { %v1209_v55 = vsel %vm1170_vm4, %v1206_v30, %v1208_v27  ;;  %v1231_v63 = vsel %vm1170_vm4, %v1208_v27, %v2670_v41  ;;  %v1595_v30 = vunpack.c.l.b16 %v1435_v0  ;;  %v1543_v37 = vunpack.c.l.b16 %v1433_v2  ;;  %v2415_v27 = vld [vmem:[%s3144_s4 + $0xc] sm:$0xff] }
 0x136   : > { %v1372_v28 = vsel %vm1334_vm3, %v1370_v16, %v1313_v52  ;;  %v1393_v49 = vsel %vm1334_vm3, %v1313_v52, %v1335_v34  ;;  %v1412_v56 = vpack.c.bf16 %v1209_v55, %v1209_v55  ;;  %v1413_v53 = vpack.c.bf16 %v1231_v63, %v1231_v63 }
 0x137   : > { %v1453_v43 = vpack.c.bf16 %v1372_v28, %v1372_v28  ;;  %v1434_v12 = vpack.c.bf16 %v1393_v49, %v1393_v49  ;;  %v1710_v16 = vpack.c.b16 %v1708_v44, %v1708_v44  ;;  %v1542_v34 = vunpack.c.l.b16 %v1432_v58 }
 0x138   : > { %v2882_v39 = vunpack.c.l.b16 %v1412_v56  ;;  %v2884_v41 = vunpack.c.l.b16 %v1413_v53  ;;  %vm1729_vm3 = vcmask 1043456   ;;  %vm1644_vm4 = vcmask 64512  }
 0x139   : > { %v1613_v11 = vunpack.c.l.b16 %v1453_v43  ;;  %v1594_v22 = vunpack.c.l.b16 %v1434_v12  ;;  %v1731_v19 = vsel %vm1729_vm3, %v1710_v16, 0  ;;  %v1553_v29 = vpack.c.b16 %v1543_v37, %v1542_v34 }
 0x13a   : > { %v1503_v4 = vpack.c.b16 %v2884_v41, %v2882_v39  ;;  %2417 = vmatpush.bf16.msra.mxu2 %v1731_v19  ;;  %2418 = vmatpush.bf16.msra.mxu3 %v1731_v19  ;;  %v1856_v32 = vpack.c.b16 %v1854_v31, %v1854_v31  ;;  %v3022_v39 = vld [vmem:[%s3147_s7] ss:$0 sm:$0xff] }
 0x13b   : > { %1626 = vrot.lane.b32.xlu0 %v1615_v21, %s2507_s19  ;;  %v1623_v24 = vpack.c.b16 %v1613_v11, %v1612_v40  ;;  %v1614_v48 = vpack.c.b16 %v1595_v30, %v1594_v22  ;;  %1739 = vmatpush.bf16.msra.mxu1 %v1731_v19  ;;  %v1787_v21 = vunpack.c.l.b16 %v1698_v18 }
 0x13c   : > { %v1861_v63 = vsel %vm1729_vm3, %v1856_v32, 0 }
 0x13d   : > { %1642 = vrot.lane.b32.xlu1 %v1623_v24, %s2507_s19  ;;  %1624 = vrot.lane.b32.xlu2 %v1614_v48, %s2507_s19  ;;  %v1789_v52 = vpack.c.b16 %v1787_v21, %v1787_v21 }
 0x13e   : > { %2419 = vmatpush.bf16.msra.mxu2 %v2415_v27  ;;  %2420 = vmatpush.bf16.msra.mxu3 %v2415_v27 }
 0x13f   : > { %1740 = vmatpush.bf16.msra.mxu1 %v2415_v27  ;;  %v1794_v0 = vsel %vm1729_vm3, %v1789_v52, 0 }
 0x142   : > { %1802 = vmatpush.bf16.msrb.mxu2 %v1794_v0  ;;  %1869 = vmatpush.bf16.msrb.mxu3 %v1861_v63 }
 0x143   : > { %1572 = vrot.lane.b32.xlu0 %v1553_v29, %s2506_s24 }
 0x145   : > { %1556 = vrot.lane.b32.xlu2 %v1545_v13, %s2506_s24 }
 0x14d   : > { %1630 = vrot.lane.b32.xlu2 %v1617_v51, %s2507_s19  ;;  %v2414_v51 = vld [vmem:[%s3144_s4] sm:$0xff] }
 0x14e   : > { %1803 = vmatpush.bf16.msrb.mxu2 %v2414_v51 }
 0x159   : > { %v1563_v17 = vpop.permute.xlu0 %1562 }
 0x15a   : > { %v1659_v5 = vsel %vm1644_vm4, %v1498_v42, %v1563_v17 }
 0x161   : > { %v1633_v6 = vpop.permute.xlu0 %1632 }
 0x162   : > { %v1685_v13 = vsel %vm1675_vm9, %v1659_v5, %v1633_v6 }
 0x163   : > { %2354 = vmatmul.msk.bf16.vlgmr.msra.gmra.mxu2 %vm1712_vm10, %v1685_v13 }
 0x169   : > { %v1565_v46 = vpop.permute.xlu1 %1564 }
 0x16a   : > { %v1662_v33 = vsel %vm1644_vm4, %v1499_v25, %v1565_v46  ;;  %v2416_v25 = vld [vmem:[%s3144_s4 + $0x18] sm:$0xff] }
 0x16b   : > { %1870 = vmatpush.bf16.msrb.mxu3 %v2416_v25 }
 0x171   : > { %v1569_v42 = vpop.permute.xlu2 %1568  ;;  %v1635_v58 = vpop.permute.xlu1 %1634 }
 0x172   : > { %v1687_v55 = vsel %vm1675_vm9, %v1662_v33, %v1635_v58  ;;  %v1668_v28 = vsel %vm1644_vm4, %v1501_v45, %v1569_v42 }
 0x173   : > { %2355 = vmatmul.msk.bf16.gmra.mxu2 %vm1712_vm10, %v1687_v55 }
 0x179   : > { %v1639_v49 = vpop.permute.xlu2 %1638  ;;  %v1567_v3 = vpop.permute.xlu0 %1566 }
 0x17a   : > { %v1691_v50 = vsel %vm1675_vm9, %v1668_v28, %v1639_v49  ;;  %v1665_v56 = vsel %vm1644_vm4, %v1500_v38, %v1567_v3 }
 0x17b   : > { %2357 = vmatmul.msk.bf16.vlgmr.msra.gmra.mxu3 %vm1712_vm10, %v1691_v50 }
 0x17d   : > { %v1637_v54 = vpop.permute.xlu1 %1636 }
 0x17e   : > { %v1689_v59 = vsel %vm1675_vm9, %v1665_v56, %v1637_v54 }
 0x181   : > { %v1571_v62 = vpop.permute.xlu2 %1570 }
 0x182   : > { %v1671_v14 = vsel %vm1644_vm4, %v1502_v10, %v1571_v62 }
 0x183   : > { %2356 = vmatmul.msk.bf16.gmra.mxu2 %vm1712_vm10, %v1689_v59 }
 0x185   : > { %v1555_v45 = vpop.permute.xlu1 %1554 }
 0x186   : > { %v1647_v53 = vsel %vm1644_vm4, %v1494_v1, %v1555_v45  ;;  %v3152_v1 = vpack.c.b16 %v2715_v36, %v2713_v35 }
 0x18d   : > { %v1629_v61 = vpop.permute.xlu1 %1628 }
 0x195   : > { %v1561_v20 = vpop.permute.xlu1 %1560 }
 0x197   : > { %v1625_v43 = vpop.permute.xlu2 %1624 }
 0x198   : > { %v1677_v12 = vsel %vm1675_vm9, %v1647_v53, %v1625_v43 }
 0x199   : > { %2363 = vmatmul.msk.bf16.vlgmr.msrb.gmra.mxu2 %vm1712_vm10, %v1677_v12 }
 0x19d   : > { %v1641_v57 = vpop.permute.xlu0 %1640 }
 0x19e   : > { %v1693_v38 = vsel %vm1675_vm9, %v1671_v14, %v1641_v57 }
 0x19f   : > { %2358 = vmatmul.msk.bf16.gmra.mxu3 %vm1712_vm10, %v1693_v38  ;;  %v1557_v44 = vpop.permute.xlu2 %1556 }
 0x1a0   : > { %v1650_v7 = vsel %vm1644_vm4, %v3152_v1, %v1557_v44 }
 0x1a5   : > { %v1559_v2 = vpop.permute.xlu0 %1558 }
 0x1a6   : > { %v1653_v60 = vsel %vm1644_vm4, %v1496_v26, %v1559_v2  ;;  %v3153_v26 = vpack.c.b16 %v2768_v9, %v2766_v8  ;;  %v1972_v9 = vld [vmem:[%s3145_s5] sm:$0xf] }
 0x1a7   : > { %v1681_v10 = vsel %vm1675_vm9, %v1653_v60, %v1629_v61  ;;  %v1631_v23 = vpop.permute.xlu2 %1630  ;;  %v2002_v11 = vsel %vm1729_vm3, %v1972_v9, 0 }
 0x1a8   : > { %v1656_v35 = vsel %vm1644_vm4, %v3153_v26, %v1561_v20  ;;  %2011 = vmatpush.bf16.msrb.mxu1 %v2002_v11 }
 0x1a9   : > { %v1683_v36 = vsel %vm1675_vm9, %v1656_v35, %v1631_v23 }
 0x1ad   : > { %v1627_v15 = vpop.permute.xlu0 %1626 }
 0x1ae   : > { %v1679_v30 = vsel %vm1675_vm9, %v1650_v7, %v1627_v15 }
 0x1af   : > { %2378 = vmatmul.msk.bf16.vlgmr.msrb.gmra.mxu3 %vm1712_vm10, %v1681_v10  ;;  %2351 = vmatmul.msk.bf16.vlgmr.msra.gmra.mxu1 %vm1712_vm10, %v1679_v30  ;;  %v1643_v29 = vpop.permute.xlu1 %1642 }
 0x1b0   : > { %2364 = vmatmul.msk.bf16.gmra.mxu2 %vm1712_vm10, %v1679_v30 }
 0x1b5   : > { %v1573_v48 = vpop.permute.xlu0 %1572 }
 0x1b6   : > { %v1674_v27 = vsel %vm1644_vm4, %v1503_v4, %v1573_v48 }
 0x1b7   : > { %v1695_v17 = vsel %vm1675_vm9, %v1674_v27, %v1643_v29 }
 0x1bf   : > { %2352 = vmatmul.msk.bf16.gmra.mxu1 %vm1712_vm10, %v1681_v10  ;;  %2379 = vmatmul.msk.bf16.gmra.mxu3 %vm1712_vm10, %v1683_v36 }
 0x1c0   : > { %2365 = vmatmul.msk.bf16.gmra.mxu2 %vm1712_vm10, %v1681_v10 }
 0x1cf   : > { %2353 = vmatmul.msk.bf16.gmra.mxu1 %vm1712_vm10, %v1683_v36  ;;  %2380 = vmatmul.msk.bf16.gmra.mxu3 %vm1712_vm10, %v1685_v13 }
 0x1d0   : > { %2366 = vmatmul.msk.bf16.gmra.mxu2 %vm1712_vm10, %v1683_v36 }
 0x1df   : > { %2381 = vmatmul.msk.bf16.gmra.mxu3 %vm1712_vm10, %v1687_v55 }
 0x1e0   : > { %2367 = vmatmul.msk.bf16.gmra.mxu2 %vm1712_vm10, %v1685_v13 }
 0x1e6   : > { %v2983_v8 = vpop.f32.mrf.mxu2 }
 0x1ee   : > { %v2990_v40 = vpop.f32.mrf.mxu2 }
 0x1ef   : > { %2382 = vmatmul.msk.bf16.gmra.mxu3 %vm1712_vm10, %v1689_v59 }
 0x1f0   : > { %2368 = vmatmul.msk.bf16.gmra.mxu2 %vm1712_vm10, %v1687_v55 }
 0x1f6   : > { %v2993_v22 = vpop.f32.mrf.mxu2 }
 0x1fe   : > { %v2997_v16 = vpop.f32.mrf.mxu2  ;;  %v3002_v24 = vpop.f32.mrf.mxu3 }
 0x1ff   : > { %2383 = vmatmul.msk.bf16.gmra.mxu3 %vm1712_vm10, %v1691_v50 }
 0x200   : > { %2369 = vmatmul.msk.bf16.gmra.mxu2 %vm1712_vm10, %v1689_v59 }
 0x206   : > { %v2999_v34 = vpop.f32.mrf.mxu2  ;;  %v3007_v19 = vpop.f32.mrf.mxu3 }
 0x20e   : > { %v3005_v37 = vpop.f32.mrf.mxu2 }
 0x20f   : > { %2384 = vmatmul.msk.bf16.gmra.mxu3 %vm1712_vm10, %v1693_v38 }
 0x210   : > { %2370 = vmatmul.msk.bf16.gmra.mxu2 %vm1712_vm10, %v1691_v50 }
 0x21c   : > { %v1805_v18 = vpop.f32.mrf.mxu2 }
 0x21f   : > { %2385 = vmatmul.msk.bf16.gmra.mxu3 %vm1712_vm10, %v1695_v17 }
 0x222   : > { %v3015_v21 = vpop.f32.mrf.mxu3 }
 0x224   : > { %v1807_v0 = vpop.f32.mrf.mxu2 }
 0x22a   : > { %v3017_v52 = vpop.f32.mrf.mxu3 }
 0x22c   : > { %v1742_v5 = vpop.f32.mrf.mxu1 }
 0x22d   : > { %v1806_v47 = vadd.f32 %v1805_v18, %v1742_v5 }
 0x232   : > { %v1872_v6 = vpop.f32.mrf.mxu3 }
 0x233   : > { %v1810_v13 = vpop.f32.mrf.mxu2  ;;  %v1912_v51 = vadd.f32 %v1872_v6, %v1806_v47 }
 0x234   : > { %v1744_v46 = vpop.f32.mrf.mxu1 }
 0x235   : > { %v1808_v41 = vadd.f32 %v1807_v0, %v1744_v46  ;;  %v1932_v31 = vadd.f32 %v3022_v39, %v1912_v51 }
 0x237   : > { %v1948_v55 = vmax.f32 %v1932_v31, 0.0 }
 0x23a   : > { %v1874_v4 = vpop.f32.mrf.mxu3 }
 0x23b   : > { %v1812_v32 = vpop.f32.mrf.mxu2  ;;  %v1913_v33 = vadd.f32 %v1874_v4, %v1808_v41 }
 0x23c   : > { %v1747_v42 = vpop.f32.mrf.mxu1 }
 0x23d   : > { %v1933_v58 = vadd.f32 %v3022_v39, %v1913_v33  ;;  %v1811_v54 = vadd.f32 %v1810_v13, %v1747_v42 }
 0x23f   : > { %v1949_v63 = vmax.f32 %v1933_v58, 0.0 }
 0x241   : > { %v1964_v28 = vpack.c.bf16 %v1949_v63, %v1948_v55 }
 0x242   : > { %v1877_v49 = vpop.f32.mrf.mxu3 }
 0x243   : > { %v1815_v50 = vpop.f32.mrf.mxu2  ;;  %2386 = vmatmul.msk.bf16.vlgmr.msrb.gmra.mxu1 %vm1644_vm4, %v1964_v28  ;;  %v1914_v25 = vadd.f32 %v1877_v49, %v1811_v54 }
 0x244   : > { %v1749_v3 = vpop.f32.mrf.mxu1 }
 0x245   : > { %v1813_v56 = vadd.f32 %v1812_v32, %v1749_v3  ;;  %v1934_v62 = vadd.f32 %v3022_v39, %v1914_v25 }
 0x247   : > { %v1950_v14 = vmax.f32 %v1934_v62, 0.0 }
 0x24a   : > { %v1879_v59 = vpop.f32.mrf.mxu3 }
 0x24b   : > { %v1817_v45 = vpop.f32.mrf.mxu2  ;;  %v1915_v53 = vadd.f32 %v1879_v59, %v1813_v56 }
 0x24c   : > { %v1752_v43 = vpop.f32.mrf.mxu1 }
 0x24d   : > { %v1935_v12 = vadd.f32 %v3022_v39, %v1915_v53  ;;  %v1816_v60 = vadd.f32 %v1815_v50, %v1752_v43 }
 0x24f   : > { %v1951_v57 = vmax.f32 %v1935_v12, 0.0 }
 0x251   : > { %v1965_v38 = vpack.c.bf16 %v1951_v57, %v1950_v14 }
 0x252   : > { %v1882_v2 = vpop.f32.mrf.mxu3 }
 0x253   : > { %v1820_v44 = vpop.f32.mrf.mxu2  ;;  %2387 = vmatmul.msk.bf16.gmra.mxu1 %vm1644_vm4, %v1965_v38  ;;  %v1916_v1 = vadd.f32 %v1882_v2, %v1816_v60 }
 0x254   : > { %v1754_v61 = vpop.f32.mrf.mxu1  ;;  %v1821_v48 = vadd.f32 %v1820_v44, %v2983_v8 }
 0x255   : > { %v1818_v7 = vadd.f32 %v1817_v45, %v1754_v61  ;;  %v1936_v10 = vadd.f32 %v3022_v39, %v1916_v1 }
 0x257   : > { %v1952_v26 = vmax.f32 %v1936_v10, 0.0 }
 0x25a   : > { %v1884_v15 = vpop.f32.mrf.mxu3 }
 0x25b   : > { %v1822_v30 = vpop.f32.mrf.mxu2  ;;  %v1917_v20 = vadd.f32 %v1884_v15, %v1818_v7 }
 0x25c   : > { %v1823_v29 = vadd.f32 %v1822_v30, %v2990_v40 }
 0x25d   : > { %v1937_v23 = vadd.f32 %v3022_v39, %v1917_v20 }
 0x25f   : > { %v1953_v35 = vmax.f32 %v1937_v23, 0.0 }
 0x261   : > { %v1966_v36 = vpack.c.bf16 %v1953_v35, %v1952_v26 }
 0x262   : > { %v1887_v9 = vpop.f32.mrf.mxu3 }
 0x263   : > { %v1825_v11 = vpop.f32.mrf.mxu2  ;;  %2388 = vmatmul.msk.bf16.gmra.mxu1 %vm1644_vm4, %v1966_v36  ;;  %v1918_v27 = vadd.f32 %v1887_v9, %v1821_v48  ;;  %v503_v48 = vld [vmem:[%s2612_s22] sm:$0xff]  }
 0x264   : > { %v1826_v4 = vadd.f32 %v1825_v11, %v2993_v22 }
 0x265   : > { %v1938_v18 = vadd.f32 %v3022_v39, %v1918_v27 }
 0x267   : > { %v1954_v13 = vmax.f32 %v1938_v18, 0.0 }
 0x26a   : > { %v1889_v17 = vpop.f32.mrf.mxu3 }
 0x26b   : > { %v1827_v0 = vpop.f32.mrf.mxu2  ;;  %v1919_v5 = vadd.f32 %v1889_v17, %v1823_v29 }
 0x26c   : > { %v1828_v31 = vadd.f32 %v1827_v0, %v2997_v16  ;;  %v2054_v0 = vunpack.c.h.bf16 %v503_v48 }
 0x26d   : > { %v1939_v6 = vadd.f32 %v3022_v39, %v1919_v5 }
 0x26f   : > { %v1955_v46 = vmax.f32 %v1939_v6, 0.0 }
 0x271   : > { %v1967_v47 = vpack.c.bf16 %v1955_v46, %v1954_v13  ;;  %v505_v46 = vld [vmem:[%s2612_s22 + $0x8] sm:$0xff]  }
 0x272   : > { %v1892_v51 = vpop.f32.mrf.mxu3 }
 0x273   : > { %2389 = vmatmul.msk.bf16.gmra.mxu1 %vm1644_vm4, %v1967_v47  ;;  %v1830_v41 = vpop.f32.mrf.mxu2  ;;  %v1920_v8 = vadd.f32 %v1892_v51, %v1826_v4 }
 0x274   : > { %v1831_v50 = vadd.f32 %v1830_v41, %v2999_v34  ;;  %v2055_v41 = vunpack.c.l.bf16 %v505_v46 }
 0x275   : > { %v1940_v32 = vadd.f32 %v3022_v39, %v1920_v8 }
 0x277   : > { %v1956_v55 = vmax.f32 %v1940_v32, 0.0 }
 0x27a   : > { %v1894_v40 = vpop.f32.mrf.mxu3 }
 0x27b   : > { %v1921_v33 = vadd.f32 %v1894_v40, %v1828_v31  ;;  %v1832_v58 = vpop.f32.mrf.mxu2 }
 0x27c   : > { %v1833_v54 = vadd.f32 %v1832_v58, %v3005_v37 }
 0x27d   : > { %v1941_v42 = vadd.f32 %v3022_v39, %v1921_v33  ;;  %v2056_v33 = vunpack.c.h.bf16 %v505_v46 }
 0x27f   : > { %v1957_v63 = vmax.f32 %v1941_v42, 0.0 }
 0x281   : > { %v1968_v28 = vpack.c.bf16 %v1957_v63, %v1956_v55  ;;  %v507_v63 = vld [vmem:[%s2612_s22 + $0x10] sm:$0xff]  }
 0x282   : > { %v1897_v49 = vpop.f32.mrf.mxu3 }
 0x283   : > { %2390 = vmatmul.msk.bf16.gmra.mxu1 %vm1644_vm4, %v1968_v28  ;;  %v1922_v3 = vadd.f32 %v1897_v49, %v1831_v50  ;;  %v1835_v22 = vpop.f32.mrf.mxu2  ;;  %v2057_v50 = vunpack.c.l.bf16 %v507_v63 }
 0x284   : > { %v1836_v14 = vadd.f32 %v1835_v22, %v3002_v24 }
 0x285   : > { %v1942_v25 = vadd.f32 %v3022_v39, %v1922_v3 }
 0x287   : > { %v1958_v62 = vmax.f32 %v1942_v25, 0.0 }
 0x28a   : > { %v1899_v16 = vpop.f32.mrf.mxu3 }
 0x28b   : > { %v1923_v56 = vadd.f32 %v1899_v16, %v1833_v54  ;;  %v1837_v43 = vpop.f32.mrf.mxu2 }
 0x28c   : > { %v1838_v57 = vadd.f32 %v1837_v43, %v3007_v19 }
 0x28d   : > { %v1943_v59 = vadd.f32 %v3022_v39, %v1923_v56  ;;  %v2058_v56 = vunpack.c.h.bf16 %v507_v63 }
 0x28f   : > { %v1959_v45 = vmax.f32 %v1943_v59, 0.0 }
 0x291   : > { %v1969_v53 = vpack.c.bf16 %v1959_v45, %v1958_v62 }
 0x292   : > { %v1902_v12 = vpop.f32.mrf.mxu3 }
 0x293   : > { %2391 = vmatmul.msk.bf16.gmra.mxu1 %vm1644_vm4, %v1969_v53  ;;  %v1924_v34 = vadd.f32 %v1902_v12, %v1836_v14  ;;  %v1840_v44 = vpop.f32.mrf.mxu2  ;;  %v509_v53 = vld [vmem:[%s2612_s22 + $0x18] sm:$0xff]  }
 0x294   : > { %v1841_v10 = vadd.f32 %v1840_v44, %v3015_v21  ;;  %v3062_v21 = vld [vmem:[%s3148_s8] ss:$0 sm:$0xff]  ;;  %v2059_v14 = vunpack.c.l.bf16 %v509_v53  ;;  %v2060_v44 = vunpack.c.h.bf16 %v509_v53 }
 0x295   : > { %v1944_v37 = vadd.f32 %v3022_v39, %v1924_v34 }
 0x297   : > { %v1960_v61 = vmax.f32 %v1944_v37, 0.0 }
 0x29a   : > { %v1904_v38 = vpop.f32.mrf.mxu3 }
 0x29b   : > { %v1925_v2 = vadd.f32 %v1904_v38, %v1838_v57  ;;  %v1842_v24 = vpop.f32.mrf.mxu2 }
 0x29c   : > { %v1843_v19 = vadd.f32 %v1842_v24, %v3017_v52  ;;  %v2053_v52 = vunpack.c.l.bf16 %v503_v48  ;;  %v513_v48 = vld [vmem:[%s2612_s22 + $0x28] sm:$0xff]  }
 0x29d   : > { %v1945_v60 = vadd.f32 %v3022_v39, %v1925_v2 }
 0x29f   : > { %v1961_v1 = vmax.f32 %v1945_v60, 0.0 }
 0x2a1   : > { %v1970_v7 = vpack.c.bf16 %v1961_v1, %v1960_v61 }
 0x2a2   : > { %v1907_v15 = vpop.f32.mrf.mxu3 }
 0x2a3   : > { %2392 = vmatmul.msk.bf16.gmra.mxu1 %vm1644_vm4, %v1970_v7  ;;  %v1926_v30 = vadd.f32 %v1907_v15, %v1841_v10  ;;  %v511_v7 = vld [vmem:[%s2612_s22 + $0x20] sm:$0xff]  }
 0x2a4   : > { %v2061_v24 = vunpack.c.l.bf16 %v511_v7 }
 0x2a5   : > { %v1946_v23 = vadd.f32 %v3022_v39, %v1926_v30 }
 0x2a7   : > { %v1962_v36 = vmax.f32 %v1946_v23, 0.0 }
 0x2aa   : > { %v1909_v20 = vpop.f32.mrf.mxu3 }
 0x2ab   : > { %v1927_v26 = vadd.f32 %v1909_v20, %v1843_v19 }
 0x2ad   : > { %v1947_v35 = vadd.f32 %v3022_v39, %v1927_v26 }
 0x2af   : > { %v1963_v9 = vmax.f32 %v1947_v35, 0.0  ;;  %v2062_v35 = vunpack.c.h.bf16 %v511_v7 }
 0x2b1   : > { %v1971_v11 = vpack.c.bf16 %v1963_v9, %v1962_v36 }
 0x2b3   : > { %2393 = vmatmul.msk.bf16.gmra.mxu1 %vm1644_vm4, %v1971_v11 }
 0x2c0   : > { %v2013_v27 = vpop.f32.mrf.mxu1 }
 0x2c1   : > { %v2014_v29 = vadd.f32 %v3062_v21, %v2013_v27 }
 0x2c3   : > { %v2069_v17 = vadd.f32 %v2053_v52, %v2014_v29  ;;  %v2063_v29 = vunpack.c.l.bf16 %v513_v48 }
 0x2c5   : > { %v2085_v18 = vmax.f32 %v2069_v17, 0.0 }
 0x2c7   : > { %v2101_v39 = vpack.c.bf16 %v2085_v18, %v2085_v18 }
 0x2c8   : > { %v2015_v5 = vpop.f32.mrf.mxu1 }
 0x2c9   : > { %2118 = vst.msk [vmem:[%s3069_s28] sm:$0xf] %vm2117_vm11, %v2101_v39  ;;  %v2016_v6 = vadd.f32 %v3062_v21, %v2015_v5 }
 0x2cb   : > { %v2070_v13 = vadd.f32 %v2054_v0, %v2016_v6  ;;  %v2064_v6 = vunpack.c.h.bf16 %v513_v48 }
 0x2cd   : > { %v2086_v47 = vmax.f32 %v2070_v13, 0.0 }
 0x2cf   : > { %v2102_v51 = vpack.c.bf16 %v2086_v47, %v2086_v47 }
 0x2d0   : > { %v2018_v4 = vpop.f32.mrf.mxu1 }
 0x2d1   : > { %2119 = vst.msk [vmem:[%s3069_s28 + $0x4] sm:$0xf] %vm2117_vm11, %v2102_v51  ;;  %v2019_v8 = vadd.f32 %v3062_v21, %v2018_v4  ;;  %v515_v51 = vld [vmem:[%s2612_s22 + $0x30] sm:$0xff]  }
 0x2d3   : > { %v2071_v31 = vadd.f32 %v2055_v41, %v2019_v8  ;;  %v2065_v8 = vunpack.c.l.bf16 %v515_v51 }
 0x2d5   : > { %v2087_v40 = vmax.f32 %v2071_v31, 0.0 }
 0x2d7   : > { %v2103_v32 = vpack.c.bf16 %v2087_v40, %v2087_v40 }
 0x2d8   : > { %v2020_v42 = vpop.f32.mrf.mxu1 }
 0x2d9   : > { %2120 = vst.msk [vmem:[%s3069_s28 + $0x8] sm:$0xf] %vm2117_vm11, %v2103_v32  ;;  %v2021_v58 = vadd.f32 %v3062_v21, %v2020_v42 }
 0x2db   : > { %v2072_v55 = vadd.f32 %v2056_v33, %v2021_v58  ;;  %v2066_v58 = vunpack.c.h.bf16 %v515_v51 }
 0x2dd   : > { %v2088_v28 = vmax.f32 %v2072_v55, 0.0 }
 0x2df   : > { %v2104_v49 = vpack.c.bf16 %v2088_v28, %v2088_v28 }
 0x2e0   : > { %v2023_v3 = vpop.f32.mrf.mxu1 }
 0x2e1   : > { %2121 = vst.msk [vmem:[%s3069_s28 + $0xc] sm:$0xf] %vm2117_vm11, %v2104_v49  ;;  %v2024_v22 = vadd.f32 %v3062_v21, %v2023_v3  ;;  %v517_v49 = vld [vmem:[%s2612_s22 + $0x38] sm:$0xff]  }
 0x2e3   : > { %v2073_v54 = vadd.f32 %v2057_v50, %v2024_v22  ;;  %v2067_v22 = vunpack.c.l.bf16 %v517_v49 }
 0x2e5   : > { %v2089_v16 = vmax.f32 %v2073_v54, 0.0 }
 0x2e7   : > { %v2105_v25 = vpack.c.bf16 %v2089_v16, %v2089_v16 }
 0x2e8   : > { %v2025_v59 = vpop.f32.mrf.mxu1 }
 0x2e9   : > { %2122 = vst.msk [vmem:[%s3069_s28 + $0x10] sm:$0xf] %vm2117_vm11, %v2105_v25  ;;  %v2026_v62 = vadd.f32 %v3062_v21, %v2025_v59 }
 0x2eb   : > { %v2074_v45 = vadd.f32 %v2058_v56, %v2026_v62  ;;  %v2068_v62 = vunpack.c.h.bf16 %v517_v49 }
 0x2ed   : > { %v2090_v43 = vmax.f32 %v2074_v45, 0.0 }
 0x2ef   : > { %v2106_v12 = vpack.c.bf16 %v2090_v43, %v2090_v43 }
 0x2f0   : > { %v2028_v34 = vpop.f32.mrf.mxu1 }
 0x2f1   : > { %2123 = vst.msk [vmem:[%s3069_s28 + $0x14] sm:$0xf] %vm2117_vm11, %v2106_v12  ;;  %v2029_v57 = vadd.f32 %v3062_v21, %v2028_v34 }
 0x2f3   : > { %v2075_v38 = vadd.f32 %v2059_v14, %v2029_v57 }
 0x2f5   : > { %v2091_v37 = vmax.f32 %v2075_v38, 0.0 }
 0x2f7   : > { %v2107_v2 = vpack.c.bf16 %v2091_v37, %v2091_v37 }
 0x2f8   : > { %v2030_v60 = vpop.f32.mrf.mxu1 }
 0x2f9   : > { %2124 = vst.msk [vmem:[%s3069_s28 + $0x18] sm:$0xf] %vm2117_vm11, %v2107_v2  ;;  %v2031_v61 = vadd.f32 %v3062_v21, %v2030_v60 }
 0x2fb   : > { %v2076_v1 = vadd.f32 %v2060_v44, %v2031_v61 }
 0x2fd   : > { %v2092_v15 = vmax.f32 %v2076_v1, 0.0 }
 0x2ff   : > { %v2108_v10 = vpack.c.bf16 %v2092_v15, %v2092_v15 }
 0x300   : > { %v2033_v30 = vpop.f32.mrf.mxu1 }
 0x301   : > { %2125 = vst.msk [vmem:[%s3069_s28 + $0x1c] sm:$0xf] %vm2117_vm11, %v2108_v10  ;;  %v2034_v19 = vadd.f32 %v3062_v21, %v2033_v30 }
 0x303   : > { %v2077_v20 = vadd.f32 %v2061_v24, %v2034_v19 }
 0x305   : > { %v2093_v23 = vmax.f32 %v2077_v20, 0.0 }
 0x307   : > { %v2109_v26 = vpack.c.bf16 %v2093_v23, %v2093_v23 }
 0x308   : > { %v2035_v36 = vpop.f32.mrf.mxu1 }
 0x309   : > { %2126 = vst.msk [vmem:[%s3069_s28 + $0x20] sm:$0xf] %vm2117_vm11, %v2109_v26  ;;  %v2036_v9 = vadd.f32 %v3062_v21, %v2035_v36 }
 0x30b   : > { %v2078_v11 = vadd.f32 %v2062_v35, %v2036_v9 }
 0x30d   : > { %v2094_v52 = vmax.f32 %v2078_v11, 0.0 }
 0x30f   : > { %v2110_v27 = vpack.c.bf16 %v2094_v52, %v2094_v52 }
 0x310   : > { %v2038_v17 = vpop.f32.mrf.mxu1 }
 0x311   : > { %2127 = vst.msk [vmem:[%s3069_s28 + $0x24] sm:$0xf] %vm2117_vm11, %v2110_v27  ;;  %v2039_v18 = vadd.f32 %v3062_v21, %v2038_v17 }
 0x313   : > { %v2079_v39 = vadd.f32 %v2063_v29, %v2039_v18 }
 0x315   : > { %v2095_v0 = vmax.f32 %v2079_v39, 0.0 }
 0x317   : > { %v2111_v5 = vpack.c.bf16 %v2095_v0, %v2095_v0 }
 0x318   : > { %v2040_v13 = vpop.f32.mrf.mxu1 }
 0x319   : > { %2128 = vst.msk [vmem:[%s3069_s28 + $0x28] sm:$0xf] %vm2117_vm11, %v2111_v5  ;;  %v2041_v46 = vadd.f32 %v3062_v21, %v2040_v13 }
 0x31b   : > { %v2080_v47 = vadd.f32 %v2064_v6, %v2041_v46 }
 0x31d   : > { %v2096_v41 = vmax.f32 %v2080_v47, 0.0 }
 0x31f   : > { %v2112_v4 = vpack.c.bf16 %v2096_v41, %v2096_v41 }
 0x320   : > { %v2043_v31 = vpop.f32.mrf.mxu1 }
 0x321   : > { %2129 = vst.msk [vmem:[%s3069_s28 + $0x2c] sm:$0xf] %vm2117_vm11, %v2112_v4  ;;  %v2044_v40 = vadd.f32 %v3062_v21, %v2043_v31 }
 0x323   : > { %v2081_v32 = vadd.f32 %v2065_v8, %v2044_v40 }
 0x325   : > { %v2097_v33 = vmax.f32 %v2081_v32, 0.0 }
 0x327   : > { %v2113_v42 = vpack.c.bf16 %v2097_v33, %v2097_v33 }
 0x328   : > { %v2045_v55 = vpop.f32.mrf.mxu1 }
 0x329   : > { %2130 = vst.msk [vmem:[%s3069_s28 + $0x30] sm:$0xf] %vm2117_vm11, %v2113_v42  ;;  %v2046_v63 = vadd.f32 %v3062_v21, %v2045_v55 }
 0x32b   : > { %v2082_v28 = vadd.f32 %v2066_v58, %v2046_v63 }
 0x32d   : > { %v2098_v50 = vmax.f32 %v2082_v28, 0.0 }
 0x32f   : > { %v2114_v3 = vpack.c.bf16 %v2098_v50, %v2098_v50 }
 0x330   : > { %v2048_v54 = vpop.f32.mrf.mxu1 }
 0x331   : > { %2131 = vst.msk [vmem:[%s3069_s28 + $0x34] sm:$0xf] %vm2117_vm11, %v2114_v3  ;;  %v2049_v16 = vadd.f32 %v3062_v21, %v2048_v54 }
 0x333   : > { %v2083_v25 = vadd.f32 %v2067_v22, %v2049_v16 }
 0x335   : > { %v2099_v56 = vmax.f32 %v2083_v25, 0.0 }
 0x337   : > { %v2115_v59 = vpack.c.bf16 %v2099_v56, %v2099_v56 }
 0x338   : > { %v2050_v45 = vpop.f32.mrf.mxu1 }
 0x339   : > { %2132 = vst.msk [vmem:[%s3069_s28 + $0x38] sm:$0xf] %vm2117_vm11, %v2115_v59  ;;  %v2051_v53 = vadd.f32 %v3062_v21, %v2050_v45 }
 0x33b   : > { %v2084_v43 = vadd.f32 %v2068_v62, %v2051_v53 }
 0x33d   : > { %v2100_v12 = vmax.f32 %v2084_v43, 0.0 }
 0x33f   : > { %v2116_v14 = vpack.c.bf16 %v2100_v12, %v2100_v12 }
 0x341   : > { %2133 = vst.msk [vmem:[%s3069_s28 + $0x3c] sm:$0xf] %vm2117_vm11, %v2116_v14 }
 0x342 PF: > { %s19_s13 = sadd.s32 1, %s2504_s13   ;;  %s3154_s30 = smov %s2496_s11 }
 0x343   : > { %p16_p13 = scmp.ge.s32.totalorder %s19_s13, 6   ;;  %s3155_s10 = smov %s2500_s12 }
 0x344   : > { %s3156_s11 = smov %s3159_s14  ;;  %s3157_s12 = smov %s3163_s15 }
 0x345   :  { %18 = sbr.rel (!%p16_p13) target bundleno = 3 (0x3), region = 94 }

</bundles_post_ra>
